<compile_context>
chip_gen: v5e
topology: v5e:2x2
jax: 0.10.0
libtpu: 0.0.40
codegen_flags: <defaults>
</compile_context>

<pallas_src>
import functools

import numpy as np

import jax
import jax.numpy as jnp
from jax import lax
from jax.experimental import pallas as pl
from jax.experimental.pallas import tpu as pltpu


# --------------------------------------------------------------------------- #
# Pallas kernel: `nb` lane-packed images per grid step.
# --------------------------------------------------------------------------- #
def _revblockc_kernel(x1_ref, x2_ref, b1_ref, b2_ref, b3_ref,
                      w1b_ref, w2v_ref, w3a_ref, w3b_ref, y_ref, *, cm):
    H = y_ref.shape[1]
    l_in = y_ref.shape[2]            # nb * W * C   (packed in/out lanes)
    l_mid = w2v_ref.shape[1]         # nb * W * Cm  (packed intermediate lanes)
    halo = 2 * cm                    # lane halo baked into conv1's output columns

    x2 = x2_ref[0]                                          # (H, l_in) bf16

    # ---- conv1: dense 3x3 as 3 banded MXU matmuls, f32 accumulation.
    # W-halo = zero bands inside w1b (no wrapper pad); H-halo = in-register zero rows.
    # Output columns are widened by `halo` zero columns on each side so conv2 can
    # slice its kw windows without any lane concat.
    zr = jnp.zeros((1, l_in), jnp.bfloat16)
    x2p = jnp.concatenate([zr, x2, zr], axis=0)             # (H+2, l_in)
    acc1 = jnp.dot(x2p[0:H], w1b_ref[0], preferred_element_type=jnp.float32)
    acc1 = acc1 + jnp.dot(x2p[1:H + 1], w1b_ref[1],
                          preferred_element_type=jnp.float32)
    acc1 = acc1 + jnp.dot(x2p[2:H + 2], w1b_ref[2],
                          preferred_element_type=jnp.float32)
    y1 = jnp.maximum(acc1 + b1_ref[...], 0.0)               # (H, l_mid + 2*halo) f32

    # ---- conv2: depthwise 5x5 on the VPU (25 broadcast FMAs), MXU stays free.
    # kh shift = row slice of an H-halo'd copy; kw shift = static lane window into
    # the already lane-halo'd y1.  Per-tap weight vectors have the W-edge masking
    # (and BN2 scale) folded in, which also kills intra-pack image-boundary reads.
    zr2 = jnp.zeros((2, y1.shape[1]), jnp.float32)
    y1h = jnp.concatenate([zr2, y1, zr2], axis=0)           # (H+4, l_mid + 2*halo)
    acc2 = None
    for kh in range(5):
        rows = y1h[kh:kh + H]                               # (H, l_mid + 2*halo)
        for kw in range(5):
            t = kh * 5 + kw
            term = rows[:, kw * cm: kw * cm + l_mid] * w2v_ref[t:t + 1, :]
            acc2 = term if acc2 is None else acc2 + term
    y2 = jnp.maximum(acc2 + b2_ref[...], 0.0)               # (H, l_mid) f32

    # ---- conv3 (1x1): no channel concat -> two accumulating MXU matmuls against
    # block-diagonal bf16 weights (BN3 scale folded); w3a has zero rows at y1's
    # lane-halo positions so y1 is consumed unsliced.
    z = jnp.dot(y1.astype(jnp.bfloat16), w3a_ref[...],
                preferred_element_type=jnp.float32)
    z = z + jnp.dot(y2.astype(jnp.bfloat16), w3b_ref[...],
                    preferred_element_type=jnp.float32)
    z = z + b3_ref[...]

    # ---- reversible residual: y = x1 + func(x2); 256-lane-dense f32 store.
    y_ref[0] = x1_ref[0] + z


# --------------------------------------------------------------------------- #
# Pack parameters into lane-dense banded / block-diagonal operands (numpy,
# trace/compile time only).  BN scales folded into weights, biases kept in f32.
# --------------------------------------------------------------------------- #
def _pack_params(params, W, nb, wdtype=jnp.bfloat16):
    (w1, s1, b1, w2, s2, b2, w3, s3, b3) = [np.asarray(p, np.float32) for p in params]
    C = w3.shape[0]
    Cm = C // 2
    Lin, Lmid = nb * W * C, nb * W * Cm
    halo = 2 * Cm
    Lpad = Lmid + 2 * halo

    # conv1: banded matrix per kh, block-diagonal over packed images, zero bands
    # for the W halo (pad=1), BN1 scale folded; output columns widened by `halo`.
    w1s = w1 * s1.reshape(1, 1, 1, Cm)
    B1 = np.zeros((3, Lin, Lmid), np.float32)
    for j in range(nb):
        ro, co = j * W * C, j * W * Cm
        for kh in range(3):
            for kw in range(3):
                for w in range(W):
                    wi = w + kw - 1
                    if 0 <= wi < W:
                        B1[kh, ro + wi * C: ro + (wi + 1) * C,
                           co + w * Cm: co + (w + 1) * Cm] = w1s[kh, kw]
    B1p = np.zeros((3, Lin, Lpad), np.float32)
    B1p[:, :, halo:halo + Lmid] = B1

    # conv2 (depthwise 5x5): per-tap lane vectors, W-edge masking + BN2 scale folded.
    w2s = w2 * s2.reshape(1, 1, Cm)
    W2V = np.zeros((25, Lmid), np.float32)
    for j in range(nb):
        co = j * W * Cm
        for kh in range(5):
            for kw in range(5):
                for w in range(W):
                    if 0 <= w + kw - 2 < W:
                        W2V[kh * 5 + kw, co + w * Cm: co + (w + 1) * Cm] = w2s[kh, kw]

    # conv3 (1x1): split w3 into block-diagonal halves, BN3 scale folded; the y1
    # half gets zero rows at the lane-halo positions.
    w3s = w3 * s3.reshape(1, C)
    W3a = np.zeros((Lmid, Lin), np.float32)
    W3b = np.zeros((Lmid, Lin), np.float32)
    for j in range(nb):
        for w in range(W):
            r = j * W * Cm + w * Cm
            c = j * W * C + w * C
            W3a[r:r + Cm, c:c + C] = w3s[:Cm]
            W3b[r:r + Cm, c:c + C] = w3s[Cm:]
    W3ap = np.zeros((Lpad, Lin), np.float32)
    W3ap[halo:halo + Lmid] = W3a

    # folded BN biases, tiled to lane-dense rows (b1 widened with zero halo lanes).
    b1r = np.zeros((1, Lpad), np.float32)
    b1r[0, halo:halo + Lmid] = np.tile(b1.reshape(-1), nb * W)
    b2r = np.tile(b2.reshape(-1), nb * W).reshape(1, Lmid)
    b3r = np.tile(b3.reshape(-1), nb * W).reshape(1, Lin)

    return (jnp.asarray(B1p, wdtype), jnp.asarray(W2V, jnp.float32),
            jnp.asarray(W3ap, wdtype), jnp.asarray(W3b, wdtype),
            jnp.asarray(b1r, jnp.float32), jnp.asarray(b2r, jnp.float32),
            jnp.asarray(b3r, jnp.float32))


# --------------------------------------------------------------------------- #
# Wrapper: NCHW in / NCHW out.  `nb` images are packed per grid step.
# --------------------------------------------------------------------------- #
def revblockc_forward(x1_nchw, x2_nchw, params, images_per_step=None):
    N, C, H, W = x1_nchw.shape
    Cm = C // 2
    if images_per_step is None:
        images_per_step = 2 if N % 2 == 0 else 1
    nb = images_per_step
    assert N % nb == 0, "batch must be divisible by images_per_step"
    G = N // nb
    Lin, Lmid = nb * W * C, nb * W * Cm
    Lpad = Lmid + 4 * Cm

    B1p, W2V, W3ap, W3b, b1r, b2r, b3r = _pack_params(params, W, nb)

    # NCHW -> lane-packed (G, H, nb*W*C); no halo padding here (handled in-kernel).
    def pack(x, dtype):
        x = jnp.transpose(x, (0, 2, 3, 1)).reshape(G, nb, H, W, C)
        x = jnp.transpose(x, (0, 2, 1, 3, 4))
        return x.reshape(G, H, Lin).astype(dtype)

    x1 = pack(x1_nchw, jnp.float32)
    x2 = pack(x2_nchw, jnp.bfloat16)

    operands = (x1, x2, b1r, b2r, b3r, B1p, W2V, W3ap, W3b)

    flops_per_step = (3 * 2 * H * Lin * Lpad          # conv1 MXU matmuls
                      + 25 * 2 * H * Lmid             # depthwise VPU FMAs
                      + 2 * H * Lpad * Lin            # conv3 (y1 half)
                      + 2 * H * Lmid * Lin)           # conv3 (y2 half)
    bytes_accessed = sum(int(a.size) * a.dtype.itemsize for a in operands)
    bytes_accessed += N * H * W * C * 4               # output
    cost = pl.CostEstimate(flops=G * flops_per_step, transcendentals=0,
                           bytes_accessed=bytes_accessed)

    kernel = functools.partial(_revblockc_kernel, cm=Cm)

    grid_spec = pltpu.PrefetchScalarGridSpec(
        num_scalar_prefetch=0,
        grid=(G,),
        in_specs=[
            pl.BlockSpec((1, H, Lin), lambda g: (g, 0, 0)),      # x1  (lane-packed)
            pl.BlockSpec((1, H, Lin), lambda g: (g, 0, 0)),      # x2  (lane-packed, unpadded)
            pl.BlockSpec((1, Lpad), lambda g: (0, 0)),           # bn1 bias (halo-widened)
            pl.BlockSpec((1, Lmid), lambda g: (0, 0)),           # bn2 bias
            pl.BlockSpec((1, Lin), lambda g: (0, 0)),            # bn3 bias
            pl.BlockSpec((3, Lin, Lpad), lambda g: (0, 0, 0)),   # conv1 banded weights
            pl.BlockSpec((25, Lmid), lambda g: (0, 0)),          # depthwise tap vectors
            pl.BlockSpec((Lpad, Lin), lambda g: (0, 0)),         # conv3 block-diag (y1 half)
            pl.BlockSpec((Lmid, Lin), lambda g: (0, 0)),         # conv3 block-diag (y2 half)
        ],
        out_specs=pl.BlockSpec((1, H, Lin), lambda g: (g, 0, 0)),
    )

    y = pl.pallas_call(
        kernel,
        out_shape=jax.ShapeDtypeStruct((G, H, Lin), jnp.float32),
        grid_spec=grid_spec,
        compiler_params=pltpu.CompilerParams(
            dimension_semantics=("parallel",),        # megacore: split grid over TCs
            vmem_limit_bytes=32 * 1024 * 1024),
        cost_estimate=cost,
    )(*operands)

    # lane-packed (G, H, nb*W*C) -> NCHW
    y = y.reshape(G, H, nb, W, C)
    y = jnp.transpose(y, (0, 2, 1, 3, 4)).reshape(N, H, W, C)
    y_nchw = jnp.transpose(y, (0, 3, 1, 2))
    return x2_nchw, y_nchw                            # matches PyTorch: (x2, y)


# --------------------------------------------------------------------------- #
# Deterministic parameter init (synthetic weights, BN folded to scale/bias).
# --------------------------------------------------------------------------- #
def init_params(key, in_ch):
    inter = in_ch // 2
    eps = 1e-8
    ks = jax.random.split(key, 15)

    w1 = 0.2 * jax.random.normal(ks[0], (3, 3, in_ch, inter), jnp.float32)
    w2 = 0.2 * jax.random.normal(ks[1], (5, 5, inter), jnp.float32)
    w3 = 0.2 * jax.random.normal(ks[2], (in_ch, in_ch), jnp.float32)

    def bn_fold(kg, kb, km, kv, ch):
        gamma = 1.0 + 0.1 * jax.random.normal(kg, (ch,), jnp.float32)
        beta = 0.1 * jax.random.normal(kb, (ch,), jnp.float32)
        mean = 0.1 * jax.random.normal(km, (ch,), jnp.float32)
        var = jax.random.uniform(kv, (ch,), jnp.float32, minval=0.5, maxval=1.5)
        scale = gamma / jnp.sqrt(var + eps)
        bias = beta - mean * scale
        return scale.reshape(1, ch), bias.reshape(1, ch)

    s1, b1 = bn_fold(ks[3], ks[4], ks[5], ks[6], inter)
    s2, b2 = bn_fold(ks[7], ks[8], ks[9], ks[10], inter)
    s3, b3 = bn_fold(ks[11], ks[12], ks[13], ks[14], in_ch)
    return (w1, s1, b1, w2, s2, b2, w3, s3, b3)


# --------------------------------------------------------------------------- #
# Pure-JAX reference (lax convs) with the same precision pipeline:
# conv1: bf16 x / bf16 w, f32 acc; conv2: f32 (VPU path); conv3: bf16 / f32 acc.
# --------------------------------------------------------------------------- #
def reference_forward(x1_nchw, x2_nchw, params):
    (w1, s1, b1, w2, s2, b2, w3, s3, b3) = params
    Cm = w1.shape[-1]
    C = w3.shape[0]
    dn = ('NHWC', 'HWIO', 'NHWC')
    x1 = jnp.transpose(x1_nchw, (0, 2, 3, 1)).astype(jnp.float32)
    x2 = jnp.transpose(x2_nchw, (0, 2, 3, 1)).astype(jnp.bfloat16)

    w1b = (w1 * s1.reshape(1, 1, 1, Cm)).astype(jnp.bfloat16)
    w2s = (w2 * s2.reshape(1, 1, Cm)).astype(jnp.float32)
    w3b = (w3 * s3.reshape(1, C)).astype(jnp.bfloat16)

    y1 = lax.conv_general_dilated(x2, w1b, (1, 1), [(1, 1), (1, 1)],
                                  dimension_numbers=dn,
                                  preferred_element_type=jnp.float32)
    y1 = jnp.maximum(y1 + b1.reshape(1, 1, 1, Cm), 0.0)

    y2 = lax.conv_general_dilated(y1, w2s.reshape(5, 5, 1, Cm), (1, 1),
                                  [(2, 2), (2, 2)], dimension_numbers=dn,
                                  feature_group_count=Cm,
                                  precision=lax.Precision.HIGHEST,
                                  preferred_element_type=jnp.float32)
    y2 = jnp.maximum(y2 + b2.reshape(1, 1, 1, Cm), 0.0)

    ycat = jnp.concatenate([y1.astype(jnp.bfloat16), y2.astype(jnp.bfloat16)],
                           axis=-1)
    z = lax.conv_general_dilated(ycat, w3b.reshape(1, 1, C, C), (1, 1),
                                 [(0, 0), (0, 0)], dimension_numbers=dn,
                                 preferred_element_type=jnp.float32)
    z = z + b3.reshape(1, 1, 1, C)
    y = x1 + z
    return x2_nchw, jnp.transpose(y, (0, 3, 1, 2))


if __name__ == "__main__":
    key = jax.random.PRNGKey(0)
    k1, k2, kp = jax.random.split(key, 3)

    N, C, H, W = 2, 8, 16, 16      # in_ch=8 -> inter_ch=4; nb=2 -> 256 output lanes
    x1 = jax.random.normal(k1, (N, C, H, W), jnp.float32)
    x2 = jax.random.normal(k2, (N, C, H, W), jnp.float32)
    params = init_params(kp, C)

    x2_out, y = revblockc_forward(x1, x2, params)
    jax.block_until_ready(y)

    _, y_ref = reference_forward(x1, x2, params)
    max_err = float(jnp.max(jnp.abs(y - y_ref)))
    assert jnp.allclose(y, y_ref, atol=3e-2, rtol=3e-2), f"max_err={max_err}"
    assert x2_out.shape == x2.shape and y.shape == x1.shape

    print("KERNEL_OK")
</pallas_src>

<mosaic_0001>
module attributes {stable_mosaic.version = 11 : i64} {
  func.func @_revblockc_kernel(%arg0: i32, %arg1: memref<1x16x256xf32, #tpu.memory_space<vmem>>, %arg2: memref<1x16x256xbf16, #tpu.memory_space<vmem>>, %arg3: memref<1x144xf32, #tpu.memory_space<vmem>>, %arg4: memref<1x128xf32, #tpu.memory_space<vmem>>, %arg5: memref<1x256xf32, #tpu.memory_space<vmem>>, %arg6: memref<3x256x144xbf16, #tpu.memory_space<vmem>>, %arg7: memref<25x128xf32, #tpu.memory_space<vmem>>, %arg8: memref<144x256xbf16, #tpu.memory_space<vmem>>, %arg9: memref<128x256xbf16, #tpu.memory_space<vmem>>, %arg10: memref<1x16x256xf32, #tpu.memory_space<vmem>>) attributes {dimension_semantics = [#tpu.dimension_semantics<parallel>], iteration_bounds = array<i64: 1>, scalar_prefetch = 0 : i64, scratch_operands = 0 : i64, tpu.core_type = #tpu.core_type<tc>, window_params = [{transform_indices = @transform_0, window_bounds = array<i64: 1, 16, 256>}, {transform_indices = @transform_1, window_bounds = array<i64: 1, 16, 256>}, {pipeline_mode = #tpu.pipeline_mode<synchronous>, transform_indices = @transform_2, window_bounds = array<i64: 1, 144>}, {pipeline_mode = #tpu.pipeline_mode<synchronous>, transform_indices = @transform_3, window_bounds = array<i64: 1, 128>}, {pipeline_mode = #tpu.pipeline_mode<synchronous>, transform_indices = @transform_4, window_bounds = array<i64: 1, 256>}, {pipeline_mode = #tpu.pipeline_mode<synchronous>, transform_indices = @transform_5, window_bounds = array<i64: 3, 256, 144>}, {pipeline_mode = #tpu.pipeline_mode<synchronous>, transform_indices = @transform_6, window_bounds = array<i64: 25, 128>}, {pipeline_mode = #tpu.pipeline_mode<synchronous>, transform_indices = @transform_7, window_bounds = array<i64: 144, 256>}, {pipeline_mode = #tpu.pipeline_mode<synchronous>, transform_indices = @transform_8, window_bounds = array<i64: 128, 256>}, {transform_indices = @transform_9, window_bounds = array<i64: 1, 16, 256>}]} {
    %c0 = arith.constant 0 : index
    %c0_0 = arith.constant 0 : index
    %c0_1 = arith.constant 0 : index
    %0 = vector.load %arg2[%c0, %c0_0, %c0_1] : memref<1x16x256xbf16, #tpu.memory_space<vmem>>, vector<1x16x256xbf16>
    %1 = vector.shape_cast %0 : vector<1x16x256xbf16> to vector<16x256xbf16>
    %cst = arith.constant 0.000000e+00 : bf16
    %2 = vector.broadcast %cst : bf16 to vector<1x256xbf16>
    %3 = tpu.concatenate %2, %1, %2 in 0 : vector<1x256xbf16>, vector<16x256xbf16>, vector<1x256xbf16> -> vector<18x256xbf16>
    %4 = vector.extract_strided_slice %3 {offsets = [0, 0], sizes = [16, 256], strides = [1, 1]} : vector<18x256xbf16> to vector<16x256xbf16>
    %c0_2 = arith.constant 0 : index
    %c0_3 = arith.constant 0 : index
    %c0_4 = arith.constant 0 : index
    %5 = vector.load %arg6[%c0_2, %c0_3, %c0_4] : memref<3x256x144xbf16, #tpu.memory_space<vmem>>, vector<1x256x144xbf16>
    %6 = vector.shape_cast %5 : vector<1x256x144xbf16> to vector<256x144xbf16>
    %cst_5 = arith.constant dense<0.000000e+00> : vector<16x144xf32>
    %7 = tpu.matmul %4, %6, %cst_5 {dimension_numbers = #tpu.dot_dimension_numbers<[1], [0], [0], [1], [0, 0, 1, 1], [], []>} : vector<16x256xbf16>, vector<256x144xbf16>, vector<16x144xf32> -> vector<16x144xf32>
    %8 = vector.extract_strided_slice %3 {offsets = [1, 0], sizes = [16, 256], strides = [1, 1]} : vector<18x256xbf16> to vector<16x256xbf16>
    %c1 = arith.constant 1 : index
    %c0_6 = arith.constant 0 : index
    %c0_7 = arith.constant 0 : index
    %9 = vector.load %arg6[%c1, %c0_6, %c0_7] : memref<3x256x144xbf16, #tpu.memory_space<vmem>>, vector<1x256x144xbf16>
    %10 = vector.shape_cast %9 : vector<1x256x144xbf16> to vector<256x144xbf16>
    %cst_8 = arith.constant dense<0.000000e+00> : vector<16x144xf32>
    %11 = tpu.matmul %8, %10, %cst_8 {dimension_numbers = #tpu.dot_dimension_numbers<[1], [0], [0], [1], [0, 0, 1, 1], [], []>} : vector<16x256xbf16>, vector<256x144xbf16>, vector<16x144xf32> -> vector<16x144xf32>
    %12 = arith.addf %7, %11 : vector<16x144xf32>
    %13 = vector.extract_strided_slice %3 {offsets = [2, 0], sizes = [16, 256], strides = [1, 1]} : vector<18x256xbf16> to vector<16x256xbf16>
    %c2 = arith.constant 2 : index
    %c0_9 = arith.constant 0 : index
    %c0_10 = arith.constant 0 : index
    %14 = vector.load %arg6[%c2, %c0_9, %c0_10] : memref<3x256x144xbf16, #tpu.memory_space<vmem>>, vector<1x256x144xbf16>
    %15 = vector.shape_cast %14 : vector<1x256x144xbf16> to vector<256x144xbf16>
    %cst_11 = arith.constant dense<0.000000e+00> : vector<16x144xf32>
    %16 = tpu.matmul %13, %15, %cst_11 {dimension_numbers = #tpu.dot_dimension_numbers<[1], [0], [0], [1], [0, 0, 1, 1], [], []>} : vector<16x256xbf16>, vector<256x144xbf16>, vector<16x144xf32> -> vector<16x144xf32>
    %17 = arith.addf %12, %16 : vector<16x144xf32>
    %c0_12 = arith.constant 0 : index
    %c0_13 = arith.constant 0 : index
    %18 = vector.load %arg3[%c0_12, %c0_13] : memref<1x144xf32, #tpu.memory_space<vmem>>, vector<1x144xf32>
    %19 = vector.broadcast %18 : vector<1x144xf32> to vector<16x144xf32>
    %20 = arith.addf %17, %19 : vector<16x144xf32>
    %cst_14 = arith.constant 0.000000e+00 : f32
    %21 = vector.broadcast %cst_14 : f32 to vector<16x144xf32>
    %22 = arith.maximumf %20, %21 : vector<16x144xf32>
    %cst_15 = arith.constant 0.000000e+00 : f32
    %23 = vector.broadcast %cst_15 : f32 to vector<2x144xf32>
    %24 = tpu.concatenate %23, %22, %23 in 0 : vector<2x144xf32>, vector<16x144xf32>, vector<2x144xf32> -> vector<20x144xf32>
    %25 = vector.extract_strided_slice %24 {offsets = [0, 0], sizes = [16, 144], strides = [1, 1]} : vector<20x144xf32> to vector<16x144xf32>
    %26 = vector.extract_strided_slice %25 {offsets = [0, 0], sizes = [16, 128], strides = [1, 1]} : vector<16x144xf32> to vector<16x128xf32>
    %c0_16 = arith.constant 0 : index
    %c0_17 = arith.constant 0 : index
    %27 = vector.load %arg7[%c0_16, %c0_17] : memref<25x128xf32, #tpu.memory_space<vmem>>, vector<1x128xf32>
    %28 = vector.broadcast %27 : vector<1x128xf32> to vector<16x128xf32>
    %29 = arith.mulf %26, %28 : vector<16x128xf32>
    %30 = vector.extract_strided_slice %25 {offsets = [0, 4], sizes = [16, 128], strides = [1, 1]} : vector<16x144xf32> to vector<16x128xf32>
    %c1_18 = arith.constant 1 : index
    %c0_19 = arith.constant 0 : index
    %31 = vector.load %arg7[%c1_18, %c0_19] : memref<25x128xf32, #tpu.memory_space<vmem>>, vector<1x128xf32>
    %32 = vector.broadcast %31 : vector<1x128xf32> to vector<16x128xf32>
    %33 = arith.mulf %30, %32 : vector<16x128xf32>
    %34 = arith.addf %29, %33 : vector<16x128xf32>
    %35 = vector.extract_strided_slice %25 {offsets = [0, 8], sizes = [16, 128], strides = [1, 1]} : vector<16x144xf32> to vector<16x128xf32>
    %c2_20 = arith.constant 2 : index
    %c0_21 = arith.constant 0 : index
    %36 = vector.load %arg7[%c2_20, %c0_21] : memref<25x128xf32, #tpu.memory_space<vmem>>, vector<1x128xf32>
    %37 = vector.broadcast %36 : vector<1x128xf32> to vector<16x128xf32>
    %38 = arith.mulf %35, %37 : vector<16x128xf32>
    %39 = arith.addf %34, %38 : vector<16x128xf32>
    %40 = vector.extract_strided_slice %25 {offsets = [0, 12], sizes = [16, 128], strides = [1, 1]} : vector<16x144xf32> to vector<16x128xf32>
    %c3 = arith.constant 3 : index
    %c0_22 = arith.constant 0 : index
    %41 = vector.load %arg7[%c3, %c0_22] : memref<25x128xf32, #tpu.memory_space<vmem>>, vector<1x128xf32>
    %42 = vector.broadcast %41 : vector<1x128xf32> to vector<16x128xf32>
    %43 = arith.mulf %40, %42 : vector<16x128xf32>
    %44 = arith.addf %39, %43 : vector<16x128xf32>
    %45 = vector.extract_strided_slice %25 {offsets = [0, 16], sizes = [16, 128], strides = [1, 1]} : vector<16x144xf32> to vector<16x128xf32>
    %c4 = arith.constant 4 : index
    %c0_23 = arith.constant 0 : index
    %46 = vector.load %arg7[%c4, %c0_23] : memref<25x128xf32, #tpu.memory_space<vmem>>, vector<1x128xf32>
    %47 = vector.broadcast %46 : vector<1x128xf32> to vector<16x128xf32>
    %48 = arith.mulf %45, %47 : vector<16x128xf32>
    %49 = arith.addf %44, %48 : vector<16x128xf32>
    %50 = vector.extract_strided_slice %24 {offsets = [1, 0], sizes = [16, 144], strides = [1, 1]} : vector<20x144xf32> to vector<16x144xf32>
    %51 = vector.extract_strided_slice %50 {offsets = [0, 0], sizes = [16, 128], strides = [1, 1]} : vector<16x144xf32> to vector<16x128xf32>
    %c5 = arith.constant 5 : index
    %c0_24 = arith.constant 0 : index
    %52 = vector.load %arg7[%c5, %c0_24] : memref<25x128xf32, #tpu.memory_space<vmem>>, vector<1x128xf32>
    %53 = vector.broadcast %52 : vector<1x128xf32> to vector<16x128xf32>
    %54 = arith.mulf %51, %53 : vector<16x128xf32>
    %55 = arith.addf %49, %54 : vector<16x128xf32>
    %56 = vector.extract_strided_slice %50 {offsets = [0, 4], sizes = [16, 128], strides = [1, 1]} : vector<16x144xf32> to vector<16x128xf32>
    %c6 = arith.constant 6 : index
    %c0_25 = arith.constant 0 : index
    %57 = vector.load %arg7[%c6, %c0_25] : memref<25x128xf32, #tpu.memory_space<vmem>>, vector<1x128xf32>
    %58 = vector.broadcast %57 : vector<1x128xf32> to vector<16x128xf32>
    %59 = arith.mulf %56, %58 : vector<16x128xf32>
    %60 = arith.addf %55, %59 : vector<16x128xf32>
    %61 = vector.extract_strided_slice %50 {offsets = [0, 8], sizes = [16, 128], strides = [1, 1]} : vector<16x144xf32> to vector<16x128xf32>
    %c7 = arith.constant 7 : index
    %c0_26 = arith.constant 0 : index
    %62 = vector.load %arg7[%c7, %c0_26] : memref<25x128xf32, #tpu.memory_space<vmem>>, vector<1x128xf32>
    %63 = vector.broadcast %62 : vector<1x128xf32> to vector<16x128xf32>
    %64 = arith.mulf %61, %63 : vector<16x128xf32>
    %65 = arith.addf %60, %64 : vector<16x128xf32>
    %66 = vector.extract_strided_slice %50 {offsets = [0, 12], sizes = [16, 128], strides = [1, 1]} : vector<16x144xf32> to vector<16x128xf32>
    %c8 = arith.constant 8 : index
    %c0_27 = arith.constant 0 : index
    %67 = vector.load %arg7[%c8, %c0_27] : memref<25x128xf32, #tpu.memory_space<vmem>>, vector<1x128xf32>
    %68 = vector.broadcast %67 : vector<1x128xf32> to vector<16x128xf32>
    %69 = arith.mulf %66, %68 : vector<16x128xf32>
    %70 = arith.addf %65, %69 : vector<16x128xf32>
    %71 = vector.extract_strided_slice %50 {offsets = [0, 16], sizes = [16, 128], strides = [1, 1]} : vector<16x144xf32> to vector<16x128xf32>
    %c9 = arith.constant 9 : index
    %c0_28 = arith.constant 0 : index
    %72 = vector.load %arg7[%c9, %c0_28] : memref<25x128xf32, #tpu.memory_space<vmem>>, vector<1x128xf32>
    %73 = vector.broadcast %72 : vector<1x128xf32> to vector<16x128xf32>
    %74 = arith.mulf %71, %73 : vector<16x128xf32>
    %75 = arith.addf %70, %74 : vector<16x128xf32>
    %76 = vector.extract_strided_slice %24 {offsets = [2, 0], sizes = [16, 144], strides = [1, 1]} : vector<20x144xf32> to vector<16x144xf32>
    %77 = vector.extract_strided_slice %76 {offsets = [0, 0], sizes = [16, 128], strides = [1, 1]} : vector<16x144xf32> to vector<16x128xf32>
    %c10 = arith.constant 10 : index
    %c0_29 = arith.constant 0 : index
    %78 = vector.load %arg7[%c10, %c0_29] : memref<25x128xf32, #tpu.memory_space<vmem>>, vector<1x128xf32>
    %79 = vector.broadcast %78 : vector<1x128xf32> to vector<16x128xf32>
    %80 = arith.mulf %77, %79 : vector<16x128xf32>
    %81 = arith.addf %75, %80 : vector<16x128xf32>
    %82 = vector.extract_strided_slice %76 {offsets = [0, 4], sizes = [16, 128], strides = [1, 1]} : vector<16x144xf32> to vector<16x128xf32>
    %c11 = arith.constant 11 : index
    %c0_30 = arith.constant 0 : index
    %83 = vector.load %arg7[%c11, %c0_30] : memref<25x128xf32, #tpu.memory_space<vmem>>, vector<1x128xf32>
    %84 = vector.broadcast %83 : vector<1x128xf32> to vector<16x128xf32>
    %85 = arith.mulf %82, %84 : vector<16x128xf32>
    %86 = arith.addf %81, %85 : vector<16x128xf32>
    %87 = vector.extract_strided_slice %76 {offsets = [0, 8], sizes = [16, 128], strides = [1, 1]} : vector<16x144xf32> to vector<16x128xf32>
    %c12 = arith.constant 12 : index
    %c0_31 = arith.constant 0 : index
    %88 = vector.load %arg7[%c12, %c0_31] : memref<25x128xf32, #tpu.memory_space<vmem>>, vector<1x128xf32>
    %89 = vector.broadcast %88 : vector<1x128xf32> to vector<16x128xf32>
    %90 = arith.mulf %87, %89 : vector<16x128xf32>
    %91 = arith.addf %86, %90 : vector<16x128xf32>
    %92 = vector.extract_strided_slice %76 {offsets = [0, 12], sizes = [16, 128], strides = [1, 1]} : vector<16x144xf32> to vector<16x128xf32>
    %c13 = arith.constant 13 : index
    %c0_32 = arith.constant 0 : index
    %93 = vector.load %arg7[%c13, %c0_32] : memref<25x128xf32, #tpu.memory_space<vmem>>, vector<1x128xf32>
    %94 = vector.broadcast %93 : vector<1x128xf32> to vector<16x128xf32>
    %95 = arith.mulf %92, %94 : vector<16x128xf32>
    %96 = arith.addf %91, %95 : vector<16x128xf32>
    %97 = vector.extract_strided_slice %76 {offsets = [0, 16], sizes = [16, 128], strides = [1, 1]} : vector<16x144xf32> to vector<16x128xf32>
    %c14 = arith.constant 14 : index
    %c0_33 = arith.constant 0 : index
    %98 = vector.load %arg7[%c14, %c0_33] : memref<25x128xf32, #tpu.memory_space<vmem>>, vector<1x128xf32>
    %99 = vector.broadcast %98 : vector<1x128xf32> to vector<16x128xf32>
    %100 = arith.mulf %97, %99 : vector<16x128xf32>
    %101 = arith.addf %96, %100 : vector<16x128xf32>
    %102 = vector.extract_strided_slice %24 {offsets = [3, 0], sizes = [16, 144], strides = [1, 1]} : vector<20x144xf32> to vector<16x144xf32>
    %103 = vector.extract_strided_slice %102 {offsets = [0, 0], sizes = [16, 128], strides = [1, 1]} : vector<16x144xf32> to vector<16x128xf32>
    %c15 = arith.constant 15 : index
    %c0_34 = arith.constant 0 : index
    %104 = vector.load %arg7[%c15, %c0_34] : memref<25x128xf32, #tpu.memory_space<vmem>>, vector<1x128xf32>
    %105 = vector.broadcast %104 : vector<1x128xf32> to vector<16x128xf32>
    %106 = arith.mulf %103, %105 : vector<16x128xf32>
    %107 = arith.addf %101, %106 : vector<16x128xf32>
    %108 = vector.extract_strided_slice %102 {offsets = [0, 4], sizes = [16, 128], strides = [1, 1]} : vector<16x144xf32> to vector<16x128xf32>
    %c16 = arith.constant 16 : index
    %c0_35 = arith.constant 0 : index
    %109 = vector.load %arg7[%c16, %c0_35] : memref<25x128xf32, #tpu.memory_space<vmem>>, vector<1x128xf32>
    %110 = vector.broadcast %109 : vector<1x128xf32> to vector<16x128xf32>
    %111 = arith.mulf %108, %110 : vector<16x128xf32>
    %112 = arith.addf %107, %111 : vector<16x128xf32>
    %113 = vector.extract_strided_slice %102 {offsets = [0, 8], sizes = [16, 128], strides = [1, 1]} : vector<16x144xf32> to vector<16x128xf32>
    %c17 = arith.constant 17 : index
    %c0_36 = arith.constant 0 : index
    %114 = vector.load %arg7[%c17, %c0_36] : memref<25x128xf32, #tpu.memory_space<vmem>>, vector<1x128xf32>
    %115 = vector.broadcast %114 : vector<1x128xf32> to vector<16x128xf32>
    %116 = arith.mulf %113, %115 : vector<16x128xf32>
    %117 = arith.addf %112, %116 : vector<16x128xf32>
    %118 = vector.extract_strided_slice %102 {offsets = [0, 12], sizes = [16, 128], strides = [1, 1]} : vector<16x144xf32> to vector<16x128xf32>
    %c18 = arith.constant 18 : index
    %c0_37 = arith.constant 0 : index
    %119 = vector.load %arg7[%c18, %c0_37] : memref<25x128xf32, #tpu.memory_space<vmem>>, vector<1x128xf32>
    %120 = vector.broadcast %119 : vector<1x128xf32> to vector<16x128xf32>
    %121 = arith.mulf %118, %120 : vector<16x128xf32>
    %122 = arith.addf %117, %121 : vector<16x128xf32>
    %123 = vector.extract_strided_slice %102 {offsets = [0, 16], sizes = [16, 128], strides = [1, 1]} : vector<16x144xf32> to vector<16x128xf32>
    %c19 = arith.constant 19 : index
    %c0_38 = arith.constant 0 : index
    %124 = vector.load %arg7[%c19, %c0_38] : memref<25x128xf32, #tpu.memory_space<vmem>>, vector<1x128xf32>
    %125 = vector.broadcast %124 : vector<1x128xf32> to vector<16x128xf32>
    %126 = arith.mulf %123, %125 : vector<16x128xf32>
    %127 = arith.addf %122, %126 : vector<16x128xf32>
    %128 = vector.extract_strided_slice %24 {offsets = [4, 0], sizes = [16, 144], strides = [1, 1]} : vector<20x144xf32> to vector<16x144xf32>
    %129 = vector.extract_strided_slice %128 {offsets = [0, 0], sizes = [16, 128], strides = [1, 1]} : vector<16x144xf32> to vector<16x128xf32>
    %c20 = arith.constant 20 : index
    %c0_39 = arith.constant 0 : index
    %130 = vector.load %arg7[%c20, %c0_39] : memref<25x128xf32, #tpu.memory_space<vmem>>, vector<1x128xf32>
    %131 = vector.broadcast %130 : vector<1x128xf32> to vector<16x128xf32>
    %132 = arith.mulf %129, %131 : vector<16x128xf32>
    %133 = arith.addf %127, %132 : vector<16x128xf32>
    %134 = vector.extract_strided_slice %128 {offsets = [0, 4], sizes = [16, 128], strides = [1, 1]} : vector<16x144xf32> to vector<16x128xf32>
    %c21 = arith.constant 21 : index
    %c0_40 = arith.constant 0 : index
    %135 = vector.load %arg7[%c21, %c0_40] : memref<25x128xf32, #tpu.memory_space<vmem>>, vector<1x128xf32>
    %136 = vector.broadcast %135 : vector<1x128xf32> to vector<16x128xf32>
    %137 = arith.mulf %134, %136 : vector<16x128xf32>
    %138 = arith.addf %133, %137 : vector<16x128xf32>
    %139 = vector.extract_strided_slice %128 {offsets = [0, 8], sizes = [16, 128], strides = [1, 1]} : vector<16x144xf32> to vector<16x128xf32>
    %c22 = arith.constant 22 : index
    %c0_41 = arith.constant 0 : index
    %140 = vector.load %arg7[%c22, %c0_41] : memref<25x128xf32, #tpu.memory_space<vmem>>, vector<1x128xf32>
    %141 = vector.broadcast %140 : vector<1x128xf32> to vector<16x128xf32>
    %142 = arith.mulf %139, %141 : vector<16x128xf32>
    %143 = arith.addf %138, %142 : vector<16x128xf32>
    %144 = vector.extract_strided_slice %128 {offsets = [0, 12], sizes = [16, 128], strides = [1, 1]} : vector<16x144xf32> to vector<16x128xf32>
    %c23 = arith.constant 23 : index
    %c0_42 = arith.constant 0 : index
    %145 = vector.load %arg7[%c23, %c0_42] : memref<25x128xf32, #tpu.memory_space<vmem>>, vector<1x128xf32>
    %146 = vector.broadcast %145 : vector<1x128xf32> to vector<16x128xf32>
    %147 = arith.mulf %144, %146 : vector<16x128xf32>
    %148 = arith.addf %143, %147 : vector<16x128xf32>
    %149 = vector.extract_strided_slice %128 {offsets = [0, 16], sizes = [16, 128], strides = [1, 1]} : vector<16x144xf32> to vector<16x128xf32>
    %c24 = arith.constant 24 : index
    %c0_43 = arith.constant 0 : index
    %150 = vector.load %arg7[%c24, %c0_43] : memref<25x128xf32, #tpu.memory_space<vmem>>, vector<1x128xf32>
    %151 = vector.broadcast %150 : vector<1x128xf32> to vector<16x128xf32>
    %152 = arith.mulf %149, %151 : vector<16x128xf32>
    %153 = arith.addf %148, %152 : vector<16x128xf32>
    %c0_44 = arith.constant 0 : index
    %c0_45 = arith.constant 0 : index
    %154 = vector.load %arg4[%c0_44, %c0_45] : memref<1x128xf32, #tpu.memory_space<vmem>>, vector<1x128xf32>
    %155 = vector.broadcast %154 : vector<1x128xf32> to vector<16x128xf32>
    %156 = arith.addf %153, %155 : vector<16x128xf32>
    %cst_46 = arith.constant 0.000000e+00 : f32
    %157 = vector.broadcast %cst_46 : f32 to vector<16x128xf32>
    %158 = arith.maximumf %156, %157 : vector<16x128xf32>
    %159 = arith.truncf %22 : vector<16x144xf32> to vector<16x144xbf16>
    %c0_47 = arith.constant 0 : index
    %c0_48 = arith.constant 0 : index
    %160 = vector.load %arg8[%c0_47, %c0_48] : memref<144x256xbf16, #tpu.memory_space<vmem>>, vector<144x256xbf16>
    %cst_49 = arith.constant dense<0.000000e+00> : vector<16x256xf32>
    %161 = tpu.matmul %159, %160, %cst_49 {dimension_numbers = #tpu.dot_dimension_numbers<[1], [0], [0], [1], [0, 0, 1, 1], [], []>} : vector<16x144xbf16>, vector<144x256xbf16>, vector<16x256xf32> -> vector<16x256xf32>
    %162 = arith.truncf %158 : vector<16x128xf32> to vector<16x128xbf16>
    %c0_50 = arith.constant 0 : index
    %c0_51 = arith.constant 0 : index
    %163 = vector.load %arg9[%c0_50, %c0_51] : memref<128x256xbf16, #tpu.memory_space<vmem>>, vector<128x256xbf16>
    %cst_52 = arith.constant dense<0.000000e+00> : vector<16x256xf32>
    %164 = tpu.matmul %162, %163, %cst_52 {dimension_numbers = #tpu.dot_dimension_numbers<[1], [0], [0], [1], [0, 0, 1, 1], [], []>} : vector<16x128xbf16>, vector<128x256xbf16>, vector<16x256xf32> -> vector<16x256xf32>
    %165 = arith.addf %161, %164 : vector<16x256xf32>
    %c0_53 = arith.constant 0 : index
    %c0_54 = arith.constant 0 : index
    %166 = vector.load %arg5[%c0_53, %c0_54] : memref<1x256xf32, #tpu.memory_space<vmem>>, vector<1x256xf32>
    %167 = vector.broadcast %166 : vector<1x256xf32> to vector<16x256xf32>
    %168 = arith.addf %165, %167 : vector<16x256xf32>
    %c0_55 = arith.constant 0 : index
    %c0_56 = arith.constant 0 : index
    %c0_57 = arith.constant 0 : index
    %169 = vector.load %arg1[%c0_55, %c0_56, %c0_57] : memref<1x16x256xf32, #tpu.memory_space<vmem>>, vector<1x16x256xf32>
    %170 = vector.shape_cast %169 : vector<1x16x256xf32> to vector<16x256xf32>
    %171 = arith.addf %170, %168 : vector<16x256xf32>
    %c0_58 = arith.constant 0 : index
    %c0_59 = arith.constant 0 : index
    %c0_60 = arith.constant 0 : index
    %172 = vector.load %arg10[%c0_58, %c0_59, %c0_60] : memref<1x16x256xf32, #tpu.memory_space<vmem>>, vector<1x16x256xf32>
    %173 = vector.shape_cast %172 : vector<1x16x256xf32> to vector<16x256xf32>
    %174 = vector.shape_cast %171 : vector<16x256xf32> to vector<1x16x256xf32>
    tpu.vector_store %arg10[%c0_58, %c0_59, %c0_60], %174 {strides = array<i32>} : memref<1x16x256xf32, #tpu.memory_space<vmem>>, vector<1x16x256xf32>,
    return
  }
  func.func @transform_0(%arg0: i32) -> (i32, i32, i32) {
    %c0_i32 = arith.constant 0 : i32
    %c0_i32_0 = arith.constant 0 : i32
    %c0_i32_1 = arith.constant 0 : i32
    return %arg0, %c0_i32, %c0_i32_0 : i32, i32, i32
  }
  func.func @transform_1(%arg0: i32) -> (i32, i32, i32) {
    %c0_i32 = arith.constant 0 : i32
    %c0_i32_0 = arith.constant 0 : i32
    %c0_i32_1 = arith.constant 0 : i32
    return %arg0, %c0_i32, %c0_i32_0 : i32, i32, i32
  }
  func.func @transform_2(%arg0: i32) -> (i32, i32) {
    %c0_i32 = arith.constant 0 : i32
    %c0_i32_0 = arith.constant 0 : i32
    %c0_i32_1 = arith.constant 0 : i32
    return %c0_i32, %c0_i32_0 : i32, i32
  }
  func.func @transform_3(%arg0: i32) -> (i32, i32) {
    %c0_i32 = arith.constant 0 : i32
    %c0_i32_0 = arith.constant 0 : i32
    %c0_i32_1 = arith.constant 0 : i32
    return %c0_i32, %c0_i32_0 : i32, i32
  }
  func.func @transform_4(%arg0: i32) -> (i32, i32) {
    %c0_i32 = arith.constant 0 : i32
    %c0_i32_0 = arith.constant 0 : i32
    %c0_i32_1 = arith.constant 0 : i32
    return %c0_i32, %c0_i32_0 : i32, i32
  }
  func.func @transform_5(%arg0: i32) -> (i32, i32, i32) {
    %c0_i32 = arith.constant 0 : i32
    %c0_i32_0 = arith.constant 0 : i32
    %c0_i32_1 = arith.constant 0 : i32
    %c0_i32_2 = arith.constant 0 : i32
    return %c0_i32, %c0_i32_0, %c0_i32_1 : i32, i32, i32
  }
  func.func @transform_6(%arg0: i32) -> (i32, i32) {
    %c0_i32 = arith.constant 0 : i32
    %c0_i32_0 = arith.constant 0 : i32
    %c0_i32_1 = arith.constant 0 : i32
    return %c0_i32, %c0_i32_0 : i32, i32
  }
  func.func @transform_7(%arg0: i32) -> (i32, i32) {
    %c0_i32 = arith.constant 0 : i32
    %c0_i32_0 = arith.constant 0 : i32
    %c0_i32_1 = arith.constant 0 : i32
    return %c0_i32, %c0_i32_0 : i32, i32
  }
  func.func @transform_8(%arg0: i32) -> (i32, i32) {
    %c0_i32 = arith.constant 0 : i32
    %c0_i32_0 = arith.constant 0 : i32
    %c0_i32_1 = arith.constant 0 : i32
    return %c0_i32, %c0_i32_0 : i32, i32
  }
  func.func @transform_9(%arg0: i32) -> (i32, i32, i32) {
    %c0_i32 = arith.constant 0 : i32
    %c0_i32_0 = arith.constant 0 : i32
    %c0_i32_1 = arith.constant 0 : i32
    return %arg0, %c0_i32, %c0_i32_0 : i32, i32, i32
  }
}

</mosaic_0001>

<bundles_post_ra>
// kernel: tpu_custom_call.1
= control target key start
LH: loop header
LB: loop body
LE: loop exit
PB: predicated region body
PF: predicated region fallthrough
CT: control target
= control target key end

     0   :  { %vm62_vm0 = vcmask 1040384   ;;  %vm63_vm1 = vsmask.f32 256  ;;  %vm134_vm3 = vsmask.f32 7424  ;;  %s2889_s23 = smov 4   ;;  %s4667_s0 = inlined_call_operand.vmem [shape: f32[1,16,256], index: 0, kind: input, shape index: {}]   ;;  %s4668_s1 = inlined_call_operand.vmem [shape: bf16[1,16,256], index: 1, kind: input, shape index: {}]   ;;  %s4669_s2 = inlined_call_operand.vmem [shape: f32[1,144], index: 2, kind: input, shape index: {}]   ;;  %s4670_s3 = inlined_call_operand.vmem [shape: f32[1,128], index: 3, kind: input, shape index: {}]   ;;  %s4671_s4 = inlined_call_operand.vmem [shape: f32[1,256], index: 4, kind: input, shape index: {}]   ;;  %s4672_s5 = inlined_call_operand.vmem [shape: bf16[3,256,144], index: 5, kind: input, shape index: {}]   ;;  %s4673_s6 = inlined_call_operand.vmem [shape: f32[25,128], index: 6, kind: input, shape index: {}]   ;;  %s4674_s7 = inlined_call_operand.vmem [shape: bf16[144,256], index: 7, kind: input, shape index: {}]   ;;  %s4675_s8 = inlined_call_operand.vmem [shape: bf16[128,256], index: 8, kind: input, shape index: {}]   ;;  %s4676_s9 = inlined_call_operand.hbm [shape: f32[1,16,256], index: 9, kind: output, shape index: {}]  }
   0x1   :  { %v2199_v0 = vld [vmem:[%s4672_s5 + $0x170] sm:$0xf]  ;;  %v2744_v1 = vld [vmem:[%s4672_s5 + $0x174] sm:$0xf0]  ;;  %v2743_v5 = vld [vmem:[%s4672_s5 + $0x174] sm:$0xf] }
   0x2   :  { %v2263_v2 = vld [vmem:[%s4672_s5 + $0x1f0] sm:$0xf]  ;;  %v2200_v3 = vor.u32 %v2744_v1, %v2199_v0  ;;  %v2760_v4 = vld [vmem:[%s4672_s5 + $0x1f4] sm:$0xf0]  ;;  %v2201_v6 = vld [vmem:[%s4672_s5 + $0x178] sm:$0xf0] }
   0x3   :  { %v2264_v7 = vor.u32 %v2760_v4, %v2263_v2  ;;  %v2204_v8 = vor.u32 %v2743_v5, %v2201_v6  ;;  %v2759_v9 = vld [vmem:[%s4672_s5 + $0x1f4] sm:$0xf]  ;;  %v2265_v10 = vld [vmem:[%s4672_s5 + $0x1f8] sm:$0xf0]  ;;  %v2191_v11 = vld [vmem:[%s4672_s5 + $0x160] sm:$0xf] }
   0x4   :  { %321 = vmatpush.bf16.msra.mxu0 %v2200_v3  ;;  %v2268_v12 = vor.u32 %v2759_v9, %v2265_v10  ;;  %v2742_v13 = vld [vmem:[%s4672_s5 + $0x164] sm:$0xf0]  ;;  %v2255_v14 = vld [vmem:[%s4672_s5 + $0x1e0] sm:$0xf]  ;;  %v2741_v18 = vld [vmem:[%s4672_s5 + $0x164] sm:$0xf] }
   0x5   :  { %v2758_v15 = vld [vmem:[%s4672_s5 + $0x1e4] sm:$0xf0]  ;;  %335 = vmatpush.bf16.msra.mxu1 %v2264_v7  ;;  %349 = vmatpush.bf16.msra.mxu2 %v2204_v8  ;;  %v2192_v16 = vor.u32 %v2742_v13, %v2191_v11  ;;  %v2193_v19 = vld [vmem:[%s4672_s5 + $0x168] sm:$0xf0]  ;;  %v2757_v20 = vld [vmem:[%s4672_s5 + $0x1e4] sm:$0xf] }
   0x6   :  { %v2256_v17 = vor.u32 %v2758_v15, %v2255_v14  ;;  %363 = vmatpush.bf16.msra.mxu3 %v2268_v12  ;;  %v2196_v21 = vor.u32 %v2741_v18, %v2193_v19  ;;  %v2257_v22 = vld [vmem:[%s4672_s5 + $0x1e8] sm:$0xf0]  ;;  %v2183_v23 = vld [vmem:[%s4672_s5 + $0x150] sm:$0xf]  ;;  %v2740_v24 = vld [vmem:[%s4672_s5 + $0x154] sm:$0xf0] }
   0x7   :  { %v2260_v25 = vor.u32 %v2757_v20, %v2257_v22  ;;  %v2247_v26 = vld [vmem:[%s4672_s5 + $0x1d0] sm:$0xf]  ;;  %v2756_v27 = vld [vmem:[%s4672_s5 + $0x1d4] sm:$0xf0]  ;;  %v2739_v28 = vld [vmem:[%s4672_s5 + $0x154] sm:$0xf]  ;;  %v2184_v29 = vor.u32 %v2740_v24, %v2183_v23 }
   0x8   :  { %322 = vmatpush.bf16.msra.mxu0 %v2192_v16  ;;  %v2185_v30 = vld [vmem:[%s4672_s5 + $0x158] sm:$0xf0]  ;;  %v2755_v31 = vld [vmem:[%s4672_s5 + $0x1d4] sm:$0xf]  ;;  %v2248_v33 = vor.u32 %v2756_v27, %v2247_v26  ;;  %v2175_v35 = vld [vmem:[%s4672_s5 + $0x140] sm:$0xf] }
   0x9   :  { %v2249_v32 = vld [vmem:[%s4672_s5 + $0x1d8] sm:$0xf0]  ;;  %336 = vmatpush.bf16.msra.mxu1 %v2256_v17  ;;  %350 = vmatpush.bf16.msra.mxu2 %v2196_v21  ;;  %v2188_v34 = vor.u32 %v2739_v28, %v2185_v30  ;;  %v2738_v36 = vld [vmem:[%s4672_s5 + $0x144] sm:$0xf0]  ;;  %v2239_v37 = vld [vmem:[%s4672_s5 + $0x1c0] sm:$0xf] }
   0xa   :  { %364 = vmatpush.bf16.msra.mxu3 %v2260_v25  ;;  %v2252_v38 = vor.u32 %v2755_v31, %v2249_v32  ;;  %v2754_v39 = vld [vmem:[%s4672_s5 + $0x1c4] sm:$0xf0]  ;;  %v2737_v40 = vld [vmem:[%s4672_s5 + $0x144] sm:$0xf]  ;;  %v2177_v41 = vld [vmem:[%s4672_s5 + $0x148] sm:$0xf0]  ;;  %v2176_v44 = vor.u32 %v2738_v36, %v2175_v35 }
   0xb   :  { %v2753_v42 = vld [vmem:[%s4672_s5 + $0x1c4] sm:$0xf]  ;;  %v2241_v43 = vld [vmem:[%s4672_s5 + $0x1c8] sm:$0xf0]  ;;  %v2240_v45 = vor.u32 %v2754_v39, %v2239_v37  ;;  %v2180_v46 = vor.u32 %v2737_v40, %v2177_v41  ;;  %v2167_v47 = vld [vmem:[%s4672_s5 + $0x130] sm:$0xf] }
   0xc   :  { %323 = vmatpush.bf16.msra.mxu0 %v2184_v29  ;;  %v2736_v48 = vld [vmem:[%s4672_s5 + $0x134] sm:$0xf0]  ;;  %v2231_v49 = vld [vmem:[%s4672_s5 + $0x1b0] sm:$0xf]  ;;  %v2244_v50 = vor.u32 %v2753_v42, %v2241_v43  ;;  %v2735_v52 = vld [vmem:[%s4672_s5 + $0x134] sm:$0xf] }
   0xd   :  { %337 = vmatpush.bf16.msra.mxu1 %v2248_v33  ;;  %351 = vmatpush.bf16.msra.mxu2 %v2188_v34  ;;  %v2752_v51 = vld [vmem:[%s4672_s5 + $0x1b4] sm:$0xf0]  ;;  %v2169_v53 = vld [vmem:[%s4672_s5 + $0x138] sm:$0xf0]  ;;  %v2751_v54 = vld [vmem:[%s4672_s5 + $0x1b4] sm:$0xf]  ;;  %v2168_v56 = vor.u32 %v2736_v48, %v2167_v47 }
   0xe   :  { %365 = vmatpush.bf16.msra.mxu3 %v2252_v38  ;;  %v2233_v55 = vld [vmem:[%s4672_s5 + $0x1b8] sm:$0xf0]  ;;  %v2232_v57 = vor.u32 %v2752_v51, %v2231_v49  ;;  %v2172_v58 = vor.u32 %v2735_v52, %v2169_v53  ;;  %v2159_v59 = vld [vmem:[%s4672_s5 + $0x120] sm:$0xf]  ;;  %v2734_v60 = vld [vmem:[%s4672_s5 + $0x124] sm:$0xf0] }
   0xf   :  { %v2223_v61 = vld [vmem:[%s4672_s5 + $0x1a0] sm:$0xf]  ;;  %v2236_v62 = vor.u32 %v2751_v54, %v2233_v55  ;;  %v2750_v63 = vld [vmem:[%s4672_s5 + $0x1a4] sm:$0xf0]  ;;  %v2733_v0 = vld [vmem:[%s4672_s5 + $0x124] sm:$0xf]  ;;  %v2160_v4 = vor.u32 %v2734_v60, %v2159_v59 }
  0x10   :  { %324 = vmatpush.bf16.msra.mxu0 %v2176_v44  ;;  %v2161_v1 = vld [vmem:[%s4672_s5 + $0x128] sm:$0xf0]  ;;  %v2749_v2 = vld [vmem:[%s4672_s5 + $0x1a4] sm:$0xf]  ;;  %v2224_v5 = vor.u32 %v2750_v63, %v2223_v61  ;;  %v2151_v7 = vld [vmem:[%s4672_s5 + $0x110] sm:$0xf] }
  0x11   :  { %338 = vmatpush.bf16.msra.mxu1 %v2240_v45  ;;  %352 = vmatpush.bf16.msra.mxu2 %v2180_v46  ;;  %v2225_v3 = vld [vmem:[%s4672_s5 + $0x1a8] sm:$0xf0]  ;;  %v2164_v6 = vor.u32 %v2733_v0, %v2161_v1  ;;  %v2732_v8 = vld [vmem:[%s4672_s5 + $0x114] sm:$0xf0]  ;;  %v2215_v9 = vld [vmem:[%s4672_s5 + $0x190] sm:$0xf] }
  0x12   :  { %366 = vmatpush.bf16.msra.mxu3 %v2244_v50  ;;  %v2228_v10 = vor.u32 %v2749_v2, %v2225_v3  ;;  %v2748_v11 = vld [vmem:[%s4672_s5 + $0x194] sm:$0xf0]  ;;  %v2731_v12 = vld [vmem:[%s4672_s5 + $0x114] sm:$0xf]  ;;  %v2153_v13 = vld [vmem:[%s4672_s5 + $0x118] sm:$0xf0]  ;;  %v2152_v16 = vor.u32 %v2732_v8, %v2151_v7 }
  0x13   :  { %v2747_v14 = vld [vmem:[%s4672_s5 + $0x194] sm:$0xf]  ;;  %v2217_v15 = vld [vmem:[%s4672_s5 + $0x198] sm:$0xf0]  ;;  %v2143_v17 = vld [vmem:[%s4672_s5 + $0x100] sm:$0xf]  ;;  %v2216_v19 = vor.u32 %v2748_v11, %v2215_v9  ;;  %v2156_v20 = vor.u32 %v2731_v12, %v2153_v13 }
  0x14   :  { %325 = vmatpush.bf16.msra.mxu0 %v2168_v56  ;;  %v2730_v18 = vld [vmem:[%s4672_s5 + $0x104] sm:$0xf0]  ;;  %v2207_v21 = vld [vmem:[%s4672_s5 + $0x180] sm:$0xf]  ;;  %v2729_v23 = vld [vmem:[%s4672_s5 + $0x104] sm:$0xf]  ;;  %v2220_v24 = vor.u32 %v2747_v14, %v2217_v15 }
  0x15   :  { %339 = vmatpush.bf16.msra.mxu1 %v2232_v57  ;;  %353 = vmatpush.bf16.msra.mxu2 %v2172_v58  ;;  %v2746_v22 = vld [vmem:[%s4672_s5 + $0x184] sm:$0xf0]  ;;  %v2145_v25 = vld [vmem:[%s4672_s5 + $0x108] sm:$0xf0]  ;;  %v2745_v26 = vld [vmem:[%s4672_s5 + $0x184] sm:$0xf]  ;;  %v2144_v31 = vor.u32 %v2730_v18, %v2143_v17 }
  0x16   :  { %367 = vmatpush.bf16.msra.mxu3 %v2236_v62  ;;  %v2209_v27 = vld [vmem:[%s4672_s5 + $0x188] sm:$0xf0]  ;;  %v2327_v28 = vld [vmem:[%s4672_s5 + $0x70] sm:$0xf]  ;;  %v2712_v29 = vld [vmem:[%s4672_s5 + $0x74] sm:$0xf0]  ;;  %v2208_v35 = vor.u32 %v2746_v22, %v2207_v21  ;;  %v2148_v36 = vor.u32 %v2729_v23, %v2145_v25 }
  0x17   :  { %v2391_v30 = vld [vmem:[%s4672_s5 + $0xf0] sm:$0xf]  ;;  %v2728_v32 = vld [vmem:[%s4672_s5 + $0xf4] sm:$0xf0]  ;;  %v2711_v33 = vld [vmem:[%s4672_s5 + $0x74] sm:$0xf]  ;;  %v2212_v39 = vor.u32 %v2745_v26, %v2209_v27  ;;  %v2328_v40 = vor.u32 %v2712_v29, %v2327_v28 }
  0x18   :  { %326 = vmatpush.bf16.msra.mxu0 %v2160_v4  ;;  %v2329_v34 = vld [vmem:[%s4672_s5 + $0x78] sm:$0xf0]  ;;  %v2727_v37 = vld [vmem:[%s4672_s5 + $0xf4] sm:$0xf]  ;;  %v2319_v41 = vld [vmem:[%s4672_s5 + $0x60] sm:$0xf]  ;;  %v2392_v43 = vor.u32 %v2728_v32, %v2391_v30 }
  0x19   :  { %340 = vmatpush.bf16.msra.mxu1 %v2224_v5  ;;  %354 = vmatpush.bf16.msra.mxu2 %v2164_v6  ;;  %v2393_v38 = vld [vmem:[%s4672_s5 + $0xf8] sm:$0xf0]  ;;  %v2710_v42 = vld [vmem:[%s4672_s5 + $0x64] sm:$0xf0]  ;;  %v2332_v44 = vor.u32 %v2711_v33, %v2329_v34  ;;  %v2383_v45 = vld [vmem:[%s4672_s5 + $0xe0] sm:$0xf] }
  0x1a   :  { %368 = vmatpush.bf16.msra.mxu3 %v2228_v10  ;;  %v2726_v46 = vld [vmem:[%s4672_s5 + $0xe4] sm:$0xf0]  ;;  %v2709_v47 = vld [vmem:[%s4672_s5 + $0x64] sm:$0xf]  ;;  %v2396_v48 = vor.u32 %v2727_v37, %v2393_v38  ;;  %v2321_v49 = vld [vmem:[%s4672_s5 + $0x68] sm:$0xf0]  ;;  %v2320_v56 = vor.u32 %v2710_v42, %v2319_v41 }
  0x1b   :  { %v2725_v50 = vld [vmem:[%s4672_s5 + $0xe4] sm:$0xf]  ;;  %v2385_v51 = vld [vmem:[%s4672_s5 + $0xe8] sm:$0xf0]  ;;  %v2311_v52 = vld [vmem:[%s4672_s5 + $0x50] sm:$0xf]  ;;  %v2384_v61 = vor.u32 %v2726_v46, %v2383_v45  ;;  %v2324_v62 = vor.u32 %v2709_v47, %v2321_v49 }
  0x1c   :  { %327 = vmatpush.bf16.msra.mxu0 %v2152_v16  ;;  %v2708_v53 = vld [vmem:[%s4672_s5 + $0x54] sm:$0xf0]  ;;  %v2103_v54 = vld [vmem:[%s4668_s1] sm:$0xf]  ;;  %v2696_v55 = vld [vmem:[%s4668_s1 + $0x4] sm:$0xf0]  ;;  %v2388_v63 = vor.u32 %v2725_v50, %v2385_v51 }
  0x1d   :  { %341 = vmatpush.bf16.msra.mxu1 %v2216_v19  ;;  %355 = vmatpush.bf16.msra.mxu2 %v2156_v20  ;;  %v2375_v57 = vld [vmem:[%s4672_s5 + $0xd0] sm:$0xf]  ;;  %v2724_v58 = vld [vmem:[%s4672_s5 + $0xd4] sm:$0xf0]  ;;  %v2707_v59 = vld [vmem:[%s4672_s5 + $0x54] sm:$0xf]  ;;  %v2104_v60 = vor.u32 %v2696_v55, %v2103_v54  ;;  %v2312_v8 = vor.u32 %v2708_v53, %v2311_v52 }
  0x1e   :  { %369 = vmatpush.bf16.msra.mxu3 %v2220_v24  ;;  %v2313_v0 = vld [vmem:[%s4672_s5 + $0x58] sm:$0xf0]  ;;  %v2723_v1 = vld [vmem:[%s4672_s5 + $0xd4] sm:$0xf]  ;;  %v2303_v5 = vld [vmem:[%s4672_s5 + $0x40] sm:$0xf]  ;;  %v2376_v12 = vor.u32 %v2724_v58, %v2375_v57 }
  0x1f   :  { %v2377_v2 = vld [vmem:[%s4672_s5 + $0xd8] sm:$0xf0]  ;;  %v45_v3 = vshrl.u32 %v2104_v60, 16  ;;  %v48_v4 = vshll.u32 %v2104_v60, 16  ;;  %v2706_v6 = vld [vmem:[%s4672_s5 + $0x44] sm:$0xf0]  ;;  %v2316_v13 = vor.u32 %v2707_v59, %v2313_v0  ;;  %vm3242_vm2 = vmand %vm62_vm0, %vm63_vm1 }
  0x20   :  { %328 = vmatpush.bf16.msra.mxu0 %v2144_v31  ;;  %v2367_v7 = vld [vmem:[%s4672_s5 + $0xc0] sm:$0xf]  ;;  %v2695_v10 = vld [vmem:[%s4668_s1 + $0x4] sm:$0xf]  ;;  %v2105_v11 = vld [vmem:[%s4668_s1 + $0x8] sm:$0xf0]  ;;  %v2380_v18 = vor.u32 %v2723_v1, %v2377_v2  ;;  %v2304_v27 = vor.u32 %v2706_v6, %v2303_v5 }
  0x21   :  { %342 = vmatpush.bf16.msra.mxu1 %v2208_v35  ;;  %356 = vmatpush.bf16.msra.mxu2 %v2148_v36  ;;  %v47_v9 = vrot.slane %v45_v3, 7  ;;  %v2722_v14 = vld [vmem:[%s4672_s5 + $0xc4] sm:$0xf0]  ;;  %v2705_v15 = vld [vmem:[%s4672_s5 + $0x44] sm:$0xf]  ;;  %v2108_v17 = vor.u32 %v2695_v10, %v2105_v11  ;;  %s2890_s30 = smov 16  }
  0x22   :  { %370 = vmatpush.bf16.msra.mxu3 %v2212_v39  ;;  %v2305_v19 = vld [vmem:[%s4672_s5 + $0x48] sm:$0xf0]  ;;  %v2721_v20 = vld [vmem:[%s4672_s5 + $0xc4] sm:$0xf]  ;;  %v2368_v28 = vor.u32 %v2722_v14, %v2367_v7  ;;  %v2295_v30 = vld [vmem:[%s4672_s5 + $0x30] sm:$0xf] }
  0x23   :  { %v50_v21 = vor.u32 %v48_v4, %v47_v9  ;;  %v3254_v22 = vsel %vm3242_vm2, %v47_v9, 0  ;;  %v2369_v23 = vld [vmem:[%s4672_s5 + $0xc8] sm:$0xf0]  ;;  %v52_v25 = vshrl.u32 %v2108_v17, 16  ;;  %v55_v26 = vshll.u32 %v2108_v17, 16  ;;  %s2891_s12 = smov 12  }
  0x24   :  { %537 = vmatpush.bf16.msrb.mxu0 %v2328_v40  ;;  %v143_v24 = vshll.u32 %v3254_v22, 16  ;;  %v2704_v31 = vld [vmem:[%s4672_s5 + $0x34] sm:$0xf0]  ;;  %v2359_v32 = vld [vmem:[%s4672_s5 + $0xb0] sm:$0xf]  ;;  %v2308_v33 = vor.u32 %v2705_v15, %v2305_v19  ;;  %v2372_v38 = vor.u32 %v2721_v20, %v2369_v23  ;;  %s2892_s22 = smov 8  }
  0x25   :  { %551 = vmatpush.bf16.msrb.mxu1 %v2392_v43  ;;  %565 = vmatpush.bf16.msrb.mxu2 %v2332_v44  ;;  %v3262_v29 = vsel %vm3242_vm2, 0, %v50_v21  ;;  %v2720_v36 = vld [vmem:[%s4672_s5 + $0xb4] sm:$0xf0]  ;;  %v54_v37 = vrot.slane %v52_v25, 7  ;;  %v2703_v39 = vld [vmem:[%s4672_s5 + $0x34] sm:$0xf]  ;;  %v2296_v49 = vor.u32 %v2704_v31, %v2295_v30 }
  0x26   :  { %579 = vmatpush.bf16.msrb.mxu3 %v2396_v48  ;;  %v136_v34 = vshrl.u32 %v3262_v29, 16  ;;  %v138_v35 = vshll.u32 %v3262_v29, 16  ;;  %v2297_v40 = vld [vmem:[%s4672_s5 + $0x38] sm:$0xf0]  ;;  %v2719_v41 = vld [vmem:[%s4672_s5 + $0xb4] sm:$0xf]  ;;  %v2360_v50 = vor.u32 %v2720_v36, %v2359_v32 }
  0x27   :  { %v145_v43 = vrot.slane %v143_v24, 1  ;;  %v2361_v44 = vld [vmem:[%s4672_s5 + $0xb8] sm:$0xf0]  ;;  %v57_v45 = vor.u32 %v55_v26, %v54_v37  ;;  %v3292_v46 = vsel %vm3242_vm2, %v54_v37, 0  ;;  %v2287_v52 = vld [vmem:[%s4672_s5 + $0x20] sm:$0xf]  ;;  %v2300_v53 = vor.u32 %v2703_v39, %v2297_v40 }
  0x28   :  { %538 = vmatpush.bf16.msrb.mxu0 %v2320_v56  ;;  %v140_v42 = vrot.slane %v138_v35, 1  ;;  %v155_v47 = vshll.u32 %v3292_v46, 16  ;;  %v2364_v54 = vor.u32 %v2719_v41, %v2361_v44  ;;  %v2702_v57 = vld [vmem:[%s4672_s5 + $0x24] sm:$0xf0]  ;;  %v2351_v58 = vld [vmem:[%s4672_s5 + $0xa0] sm:$0xf] }
  0x29   :  { %552 = vmatpush.bf16.msrb.mxu1 %v2384_v61  ;;  %566 = vmatpush.bf16.msrb.mxu2 %v2324_v62  ;;  %v3297_v51 = vsel %vm3242_vm2, 0, %v57_v45  ;;  %v2718_v60 = vld [vmem:[%s4672_s5 + $0xa4] sm:$0xf0]  ;;  %v2701_v61 = vld [vmem:[%s4672_s5 + $0x24] sm:$0xf]  ;;  %v2288_v4 = vor.u32 %v2702_v57, %v2287_v52 }
  0x2a   :  { %580 = vmatpush.bf16.msrb.mxu3 %v2388_v63  ;;  %v141_v48 = vor.u32 %v140_v42, %v136_v34  ;;  %v148_v55 = vshrl.u32 %v3297_v51, 16  ;;  %v150_v56 = vshll.u32 %v3297_v51, 16  ;;  %v2289_v62 = vld [vmem:[%s4672_s5 + $0x28] sm:$0xf0]  ;;  %v157_v0 = vrot.slane %v155_v47, 1 }
  0x2b   :  { %v2717_v1 = vld [vmem:[%s4672_s5 + $0xa4] sm:$0xf]  ;;  %v2353_v2 = vld [vmem:[%s4672_s5 + $0xa8] sm:$0xf0]  ;;  %v2352_v5 = vor.u32 %v2718_v60, %v2351_v58  ;;  %v2279_v6 = vld [vmem:[%s4672_s5 + $0x10] sm:$0xf] }
  0x2c   :  { %539 = vmatpush.bf16.msrb.mxu0 %v2312_v8  ;;  %v146_v59 = vsel %vm134_vm3, %v141_v48, %v145_v43  ;;  %v152_v63 = vrot.slane %v150_v56, 1  ;;  %v2700_v7 = vld [vmem:[%s4672_s5 + $0x14] sm:$0xf0]  ;;  %v2292_v8 = vor.u32 %v2701_v61, %v2289_v62  ;;  %v2356_v9 = vor.u32 %v2717_v1, %v2353_v2  ;;  %v2343_v10 = vld [vmem:[%s4672_s5 + $0x90] sm:$0xf] }
  0x2d   :  { %553 = vmatpush.bf16.msrb.mxu1 %v2376_v12  ;;  %567 = vmatpush.bf16.msrb.mxu2 %v2316_v13  ;;  %v2716_v11 = vld [vmem:[%s4672_s5 + $0x94] sm:$0xf0]  ;;  %v2699_v12 = vld [vmem:[%s4672_s5 + $0x14] sm:$0xf]  ;;  %v2281_v14 = vld [vmem:[%s4672_s5 + $0x18] sm:$0xf0]  ;;  %v2280_v20 = vor.u32 %v2700_v7, %v2279_v6 }
  0x2e   :  { %581 = vmatpush.bf16.msrb.mxu3 %v2380_v18  ;;  %329 = vmatmul.bf16.vlgmr.msra.gmra.mxu0 %v146_v59  ;;  %v153_v3 = vor.u32 %v152_v63, %v148_v55  ;;  %v2715_v15 = vld [vmem:[%s4672_s5 + $0x94] sm:$0xf]  ;;  %v2345_v16 = vld [vmem:[%s4672_s5 + $0x98] sm:$0xf0]  ;;  %v2271_v17 = vld [vmem:[%s4672_s5] sm:$0xf]  ;;  %v2344_v21 = vor.u32 %v2716_v11, %v2343_v10  ;;  %v2284_v25 = vor.u32 %v2699_v12, %v2281_v14 }
  0x2f   :  { %357 = vmatmul.bf16.vlgmr.msra.gmra.mxu2 %v146_v59  ;;  %v2698_v18 = vld [vmem:[%s4672_s5 + $0x4] sm:$0xf0]  ;;  %v2335_v19 = vld [vmem:[%s4672_s5 + $0x80] sm:$0xf]  ;;  %v2348_v26 = vor.u32 %v2715_v15, %v2345_v16  ;;  %v2713_v30 = vld [vmem:[%s4672_s5 + $0x84] sm:$0xf] }
  0x30   :  { %540 = vmatpush.bf16.msrb.mxu0 %v2304_v27  ;;  %v158_v13 = vsel %vm134_vm3, %v153_v3, %v157_v0  ;;  %v2714_v23 = vld [vmem:[%s4672_s5 + $0x84] sm:$0xf0]  ;;  %v2837_v24 = vld [vmem:[%s4673_s6 + $0x1] ss:$0 sm:$0xff]  ;;  %v2697_v27 = vld [vmem:[%s4672_s5 + $0x4] sm:$0xf]  ;;  %v2272_v37 = vor.u32 %v2698_v18, %v2271_v17 }
  0x31   :  { %554 = vmatpush.bf16.msrb.mxu1 %v2368_v28  ;;  %568 = vmatpush.bf16.msrb.mxu2 %v2308_v33  ;;  %v2273_v28 = vld [vmem:[%s4672_s5 + $0x8] sm:$0xf0]  ;;  %v2487_v32 = vld [vmem:[%s4672_s5 + $0x270] sm:$0xf]  ;;  %v2776_v33 = vld [vmem:[%s4672_s5 + $0x274] sm:$0xf0] }
  0x32   :  { %582 = vmatpush.bf16.msrb.mxu3 %v2372_v38  ;;  %343 = vmatmul.bf16.vlgmr.msra.gmra.mxu1 %v158_v13  ;;  %v2337_v31 = vld [vmem:[%s4672_s5 + $0x88] sm:$0xf0]  ;;  %v2551_v34 = vld [vmem:[%s4672_s5 + $0x2f0] sm:$0xf]  ;;  %v2792_v35 = vld [vmem:[%s4672_s5 + $0x2f4] sm:$0xf0]  ;;  %v2336_v38 = vor.u32 %v2714_v23, %v2335_v19  ;;  %v2276_v42 = vor.u32 %v2697_v27, %v2273_v28  ;;  %v2488_v44 = vor.u32 %v2776_v33, %v2487_v32 }
  0x33   :  { %371 = vmatmul.bf16.vlgmr.msra.gmra.mxu3 %v158_v13  ;;  %901 = vrot.lane.b32.xlu0 %v2837_v24, %s2889_s23  ;;  %v2775_v36 = vld [vmem:[%s4672_s5 + $0x274] sm:$0xf]  ;;  %v2489_v39 = vld [vmem:[%s4672_s5 + $0x278] sm:$0xf0]  ;;  %v2340_v43 = vor.u32 %v2713_v30, %v2337_v31  ;;  %v2552_v45 = vor.u32 %v2792_v35, %v2551_v34  ;;  %v2479_v47 = vld [vmem:[%s4672_s5 + $0x260] sm:$0xf] }
  0x34   :  { %541 = vmatpush.bf16.msrb.mxu0 %v2296_v49  ;;  %v2791_v40 = vld [vmem:[%s4672_s5 + $0x2f4] sm:$0xf]  ;;  %v2553_v41 = vld [vmem:[%s4672_s5 + $0x2f8] sm:$0xf0]  ;;  %v2774_v48 = vld [vmem:[%s4672_s5 + $0x264] sm:$0xf0]  ;;  %v2492_v49 = vor.u32 %v2775_v36, %v2489_v39 }
  0x35   :  { %555 = vmatpush.bf16.msrb.mxu1 %v2360_v50  ;;  %569 = vmatpush.bf16.msrb.mxu2 %v2300_v53  ;;  %v2556_v50 = vor.u32 %v2791_v40, %v2553_v41  ;;  %v2543_v52 = vld [vmem:[%s4672_s5 + $0x2e0] sm:$0xf]  ;;  %v2790_v53 = vld [vmem:[%s4672_s5 + $0x2e4] sm:$0xf0]  ;;  %v2481_v55 = vld [vmem:[%s4672_s5 + $0x268] sm:$0xf0]  ;;  %v2480_v60 = vor.u32 %v2774_v48, %v2479_v47 }
  0x36   :  { %583 = vmatpush.bf16.msrb.mxu3 %v2364_v54  ;;  %v2773_v54 = vld [vmem:[%s4672_s5 + $0x264] sm:$0xf]  ;;  %v2545_v57 = vld [vmem:[%s4672_s5 + $0x2e8] sm:$0xf0]  ;;  %v2544_v61 = vor.u32 %v2790_v53, %v2543_v52  ;;  %v2471_v62 = vld [vmem:[%s4672_s5 + $0x250] sm:$0xf] }
  0x37   :  { %v2789_v56 = vld [vmem:[%s4672_s5 + $0x2e4] sm:$0xf]  ;;  %v2772_v63 = vld [vmem:[%s4672_s5 + $0x254] sm:$0xf0]  ;;  %v2535_v0 = vld [vmem:[%s4672_s5 + $0x2d0] sm:$0xf]  ;;  %v2484_v2 = vor.u32 %v2773_v54, %v2481_v55 }
  0x38   :  { %542 = vmatpush.bf16.msrb.mxu0 %v2288_v4  ;;  %v2838_v58 = vld [vmem:[%s4673_s6 + $0x6] ss:$0 sm:$0xff]  ;;  %v2839_v59 = vld [vmem:[%s4673_s6 + $0x4] ss:$0 sm:$0xff]  ;;  %v2788_v1 = vld [vmem:[%s4672_s5 + $0x2d4] sm:$0xf0]  ;;  %v2548_v3 = vor.u32 %v2789_v56, %v2545_v57 }
  0x39   :  { %556 = vmatpush.bf16.msrb.mxu1 %v2352_v5  ;;  %570 = vmatpush.bf16.msrb.mxu2 %v2292_v8  ;;  %v2771_v4 = vld [vmem:[%s4672_s5 + $0x254] sm:$0xf]  ;;  %v2473_v5 = vld [vmem:[%s4672_s5 + $0x258] sm:$0xf0]  ;;  %v2472_v8 = vor.u32 %v2772_v63, %v2471_v62  ;;  %v2463_v10 = vld [vmem:[%s4672_s5 + $0x240] sm:$0xf] }
  0x3a   :  { %584 = vmatpush.bf16.msrb.mxu3 %v2356_v9  ;;  %v2787_v6 = vld [vmem:[%s4672_s5 + $0x2d4] sm:$0xf]  ;;  %v2537_v7 = vld [vmem:[%s4672_s5 + $0x2d8] sm:$0xf0]  ;;  %1035 = vrot.lane.b32.xlu1 %v2838_v58, %s2889_s23  ;;  %v2536_v9 = vor.u32 %v2788_v1, %v2535_v0  ;;  %v2770_v11 = vld [vmem:[%s4672_s5 + $0x244] sm:$0xf0]  ;;  %v2476_v15 = vor.u32 %v2771_v4, %v2473_v5 }
  0x3b   :  { %988 = vrot.lane.b32.xlu0 %v2839_v59, %s2890_s30  ;;  %v2527_v12 = vld [vmem:[%s4672_s5 + $0x2c0] sm:$0xf]  ;;  %v2786_v13 = vld [vmem:[%s4672_s5 + $0x2c4] sm:$0xf0]  ;;  %v2769_v14 = vld [vmem:[%s4672_s5 + $0x244] sm:$0xf]  ;;  %v2540_v16 = vor.u32 %v2787_v6, %v2537_v7  ;;  %v2464_v24 = vor.u32 %v2770_v11, %v2463_v10 }
  0x3c   :  { %543 = vmatpush.bf16.msrb.mxu0 %v2280_v20  ;;  %v2465_v17 = vld [vmem:[%s4672_s5 + $0x248] sm:$0xf0]  ;;  %v2785_v18 = vld [vmem:[%s4672_s5 + $0x2c4] sm:$0xf]  ;;  %v2455_v20 = vld [vmem:[%s4672_s5 + $0x230] sm:$0xf] }
  0x3d   :  { %557 = vmatpush.bf16.msrb.mxu1 %v2344_v21  ;;  %571 = vmatpush.bf16.msrb.mxu2 %v2284_v25  ;;  %v2529_v19 = vld [vmem:[%s4672_s5 + $0x2c8] sm:$0xf0]  ;;  %v2840_v21 = vld [vmem:[%s4673_s6 + $0x9] ss:$0 sm:$0xff]  ;;  %v2841_v23 = vld [vmem:[%s4673_s6 + $0x8] ss:$0 sm:$0xff]  ;;  %v2528_v25 = vor.u32 %v2786_v13, %v2527_v12  ;;  %v2468_v34 = vor.u32 %v2769_v14, %v2465_v17 }
  0x3e   :  { %585 = vmatpush.bf16.msrb.mxu3 %v2348_v26  ;;  %v2768_v26 = vld [vmem:[%s4672_s5 + $0x234] sm:$0xf0]  ;;  %v2519_v27 = vld [vmem:[%s4672_s5 + $0x2b0] sm:$0xf]  ;;  %v2767_v30 = vld [vmem:[%s4672_s5 + $0x234] sm:$0xf]  ;;  %v2532_v35 = vor.u32 %v2785_v18, %v2529_v19 }
  0x3f   :  { %v2784_v28 = vld [vmem:[%s4672_s5 + $0x2b4] sm:$0xf0]  ;;  %v2457_v31 = vld [vmem:[%s4672_s5 + $0x238] sm:$0xf0]  ;;  %v2783_v32 = vld [vmem:[%s4672_s5 + $0x2b4] sm:$0xf]  ;;  %v2456_v39 = vor.u32 %v2768_v26, %v2455_v20 }
  0x40   :  { %544 = vmatpush.bf16.msrb.mxu0 %v2272_v37  ;;  %v2521_v33 = vld [vmem:[%s4672_s5 + $0x2b8] sm:$0xf0]  ;;  %v2842_v36 = vld [vmem:[%s4673_s6 + $0x2] ss:$0 sm:$0xff]  ;;  %v2520_v40 = vor.u32 %v2784_v28, %v2519_v27  ;;  %v2460_v47 = vor.u32 %v2767_v30, %v2457_v31  ;;  %v2439_v52 = vld [vmem:[%s4672_s5 + $0x210] sm:$0xf] }
  0x41   :  { %558 = vmatpush.bf16.msrb.mxu1 %v2336_v38  ;;  %572 = vmatpush.bf16.msrb.mxu2 %v2276_v42  ;;  %v2447_v37 = vld [vmem:[%s4672_s5 + $0x220] sm:$0xf]  ;;  %v2766_v38 = vld [vmem:[%s4672_s5 + $0x224] sm:$0xf0]  ;;  %v2524_v48 = vor.u32 %v2783_v32, %v2521_v33  ;;  %v2764_v53 = vld [vmem:[%s4672_s5 + $0x214] sm:$0xf0] }
  0x42   :  { %586 = vmatpush.bf16.msrb.mxu3 %v2340_v43  ;;  %1161 = vrot.lane.b32.xlu1 %v2840_v21, %s2890_s30  ;;  %v2511_v41 = vld [vmem:[%s4672_s5 + $0x2a0] sm:$0xf]  ;;  %v2782_v42 = vld [vmem:[%s4672_s5 + $0x2a4] sm:$0xf0]  ;;  %v2765_v43 = vld [vmem:[%s4672_s5 + $0x224] sm:$0xf]  ;;  %v2448_v55 = vor.u32 %v2766_v38, %v2447_v37 }
  0x43   :  { %545 = vmatmul.bf16.vlgmr.msrb.gmra.mxu0 %v3262_v29  ;;  %1119 = vrot.lane.b32.xlu0 %v2841_v23, %s2891_s12  ;;  %v2844_v54 = vld [vmem:[%s4673_s6 + $0xc] ss:$0 sm:$0xff]  ;;  %v2512_v56 = vor.u32 %v2782_v42, %v2511_v41  ;;  %v2503_v57 = vld [vmem:[%s4672_s5 + $0x290] sm:$0xf]  ;;  %v2780_v58 = vld [vmem:[%s4672_s5 + $0x294] sm:$0xf0] }
  0x44   :  { %799 = vmatpush.bf16.msra.mxu0 %v2488_v44  ;;  %573 = vmatmul.bf16.vlgmr.msrb.gmra.mxu2 %v3262_v29  ;;  %v2449_v44 = vld [vmem:[%s4672_s5 + $0x228] sm:$0xf0]  ;;  %v2763_v59 = vld [vmem:[%s4672_s5 + $0x214] sm:$0xf]  ;;  %v2505_v1 = vld [vmem:[%s4672_s5 + $0x298] sm:$0xf0] }
  0x45   :  { %813 = vmatpush.bf16.msra.mxu1 %v2552_v45  ;;  %827 = vmatpush.bf16.msra.mxu2 %v2492_v49  ;;  %v2781_v45 = vld [vmem:[%s4672_s5 + $0x2a4] sm:$0xf]  ;;  %v2513_v49 = vld [vmem:[%s4672_s5 + $0x2a8] sm:$0xf0]  ;;  %v2452_v62 = vor.u32 %v2765_v43, %v2449_v44  ;;  %v2779_v0 = vld [vmem:[%s4672_s5 + $0x294] sm:$0xf] }
  0x46   :  { %841 = vmatpush.bf16.msra.mxu3 %v2556_v50  ;;  %559 = vmatmul.bf16.vlgmr.msrb.gmra.mxu1 %v3297_v51  ;;  %v2843_v50 = vld [vmem:[%s4673_s6 + $0xd] ss:$0 sm:$0xff]  ;;  %v2516_v63 = vor.u32 %v2781_v45, %v2513_v49  ;;  %v2431_v4 = vld [vmem:[%s4672_s5 + $0x200] sm:$0xf]  ;;  %v2762_v5 = vld [vmem:[%s4672_s5 + $0x204] sm:$0xf0]  ;;  %v2508_v12 = vor.u32 %v2779_v0, %v2505_v1 }
  0x47   :  { %587 = vmatmul.bf16.vlgmr.msrb.gmra.mxu3 %v3297_v51  ;;  %930 = vrot.lane.b32.xlu2 %v2842_v36, %s2892_s22  ;;  %v2495_v6 = vld [vmem:[%s4672_s5 + $0x280] sm:$0xf]  ;;  %v2778_v7 = vld [vmem:[%s4672_s5 + $0x284] sm:$0xf0]  ;;  %v2777_v10 = vld [vmem:[%s4672_s5 + $0x284] sm:$0xf] }
  0x48   :  { %800 = vmatpush.bf16.msra.mxu0 %v2480_v60  ;;  %v2441_v60 = vld [vmem:[%s4672_s5 + $0x218] sm:$0xf0] }
  0x49   :  { %814 = vmatpush.bf16.msra.mxu1 %v2544_v61  ;;  %828 = vmatpush.bf16.msra.mxu2 %v2484_v2  ;;  %v2845_v61 = vld [vmem:[%s4673_s6 + $0x3] ss:$0 sm:$0xff]  ;;  %v632_v2 = vrot.slane %v3254_v22, 1  ;;  %v2440_v22 = vor.u32 %v2764_v53, %v2439_v52  ;;  %v2444_v11 = vor.u32 %v2763_v59, %v2441_v60 }
  0x4a   :  { %842 = vmatpush.bf16.msra.mxu3 %v2548_v3  ;;  %v635_v3 = vrot.slane %v3292_v46, 1  ;;  %1305 = vrot.lane.b32.xlu1 %v2843_v50, %s2891_s12  ;;  %v2504_v46 = vor.u32 %v2780_v58, %v2503_v57 }
  0x4b   :  { %1263 = vrot.lane.b32.xlu0 %v2844_v54, %s2892_s22 }
  0x4c   :  { %801 = vmatpush.bf16.msra.mxu0 %v2472_v8  ;;  %v2761_v8 = vld [vmem:[%s4672_s5 + $0x204] sm:$0xf] }
  0x4d   :  { %815 = vmatpush.bf16.msra.mxu1 %v2536_v9  ;;  %829 = vmatpush.bf16.msra.mxu2 %v2476_v15  ;;  %v2433_v9 = vld [vmem:[%s4672_s5 + $0x208] sm:$0xf0] }
  0x4e   :  { %843 = vmatpush.bf16.msra.mxu3 %v2540_v16 }
  0x4f   :  { %959 = vrot.lane.b32.xlu2 %v2845_v61, %s2891_s12 }
  0x50   :  { %802 = vmatpush.bf16.msra.mxu0 %v2464_v24 }
  0x51   :  { %816 = vmatpush.bf16.msra.mxu1 %v2528_v25  ;;  %830 = vmatpush.bf16.msra.mxu2 %v2468_v34 }
  0x52   :  { %844 = vmatpush.bf16.msra.mxu3 %v2532_v35 }
  0x54   :  { %803 = vmatpush.bf16.msra.mxu0 %v2456_v39 }
  0x55   :  { %817 = vmatpush.bf16.msra.mxu1 %v2520_v40  ;;  %831 = vmatpush.bf16.msra.mxu2 %v2460_v47 }
  0x56   :  { %845 = vmatpush.bf16.msra.mxu3 %v2524_v48 }
  0x58   :  { %804 = vmatpush.bf16.msra.mxu0 %v2448_v55 }
  0x59   :  { %818 = vmatpush.bf16.msra.mxu1 %v2512_v56  ;;  %832 = vmatpush.bf16.msra.mxu2 %v2452_v62 }
  0x5a   :  { %846 = vmatpush.bf16.msra.mxu3 %v2516_v63 }
  0x5b   :  { %14 = vsyncpa [#allocation3], 0  ;;  %v2497_v13 = vld [vmem:[%s4672_s5 + $0x288] sm:$0xf0]  ;;  %v2846_v14 = vld [vmem:[%s4673_s6 + $0x11] ss:$0 sm:$0xff]  ;;  %v2432_v16 = vor.u32 %v2762_v5, %v2431_v4  ;;  %v2496_v17 = vor.u32 %v2778_v7, %v2495_v6  ;;  %v2436_v21 = vor.u32 %v2761_v8, %v2433_v9 }
  0x5c   :  { %v2847_v15 = vld [vmem:[%s4673_s6 + $0x10] ss:$0 sm:$0xff]  ;;  %805 = vmatpush.bf16.msra.mxu0 %v2440_v22  ;;  %v631_v18 = vrot.slane %v3262_v29, 1  ;;  %v634_v19 = vrot.slane %v3297_v51, 1  ;;  %vm630_vm4 = vcmask 1046528   ;;  %v2500_v23 = vor.u32 %v2777_v10, %v2497_v13  ;;  %1449 = vrot.lane.b32.xlu1 %v2846_v14, %s2892_s22  ;;  %s2893_s1 = smov 116  }
  0x5d   :  { %819 = vmatpush.bf16.msra.mxu1 %v2504_v46  ;;  %v2848_v20 = vld [vmem:[%s4673_s6 + $0x7] ss:$0 sm:$0xff]  ;;  %833 = vmatpush.bf16.msra.mxu2 %v2444_v11  ;;  %v2849_v51 = vld [vmem:[%s4673_s6 + $0x15] ss:$0 sm:$0xff]  ;;  %v2850_v25 = vld [vmem:[%s4673_s6 + $0x13] ss:$0 sm:$0xff] }
  0x5e   :  { %847 = vmatpush.bf16.msra.mxu3 %v2508_v12  ;;  %1407 = vrot.lane.b32.xlu0 %v2847_v15, %s2889_s23  ;;  %v633_v24 = vsel %vm630_vm4, %v631_v18, %v632_v2  ;;  %v636_v29 = vsel %vm630_vm4, %v634_v19, %v635_v3  ;;  %v2851_v26 = vld [vmem:[%s4673_s6 + $0xb] ss:$0 sm:$0xff]  ;;  %v2852_v27 = vld [vmem:[%s4673_s6 + $0x17] ss:$0 sm:$0xff]  ;;  %v2853_v28 = vld [vmem:[%s4673_s6 + $0x18] ss:$0 sm:$0xff] }
  0x5f   :  { %1077 = vrot.lane.b32.xlu2 %v2848_v20, %s2892_s22  ;;  %v2854_v30 = vld [vmem:[%s4673_s6 + $0xe] ss:$0 sm:$0xff]  ;;  %v2855_v31 = vld [vmem:[%s4673_s6 + $0x12] ss:$0 sm:$0xff]  ;;  %v2856_v32 = vld [vmem:[%s4673_s6 + $0x16] ss:$0 sm:$0xff] }
  0x60   :  { %806 = vmatpush.bf16.msra.mxu0 %v2432_v16  ;;  %v2679_v33 = vld [vmem:[%s4674_s7 + $0x70] sm:$0xf]  ;;  %v2808_v34 = vld [vmem:[%s4674_s7 + $0x74] sm:$0xf0]  ;;  %v2671_v36 = vld [vmem:[%s4674_s7 + $0x60] sm:$0xf] }
  0x61   :  { %820 = vmatpush.bf16.msra.mxu1 %v2496_v17  ;;  %834 = vmatpush.bf16.msra.mxu2 %v2436_v21  ;;  %v2680_v35 = vor.u32 %v2808_v34, %v2679_v33  ;;  %v2806_v37 = vld [vmem:[%s4674_s7 + $0x64] sm:$0xf0]  ;;  %v2663_v39 = vld [vmem:[%s4674_s7 + $0x50] sm:$0xf]  ;;  %v2804_v40 = vld [vmem:[%s4674_s7 + $0x54] sm:$0xf0] }
  0x62   :  { %848 = vmatpush.bf16.msra.mxu3 %v2500_v23  ;;  %v2672_v38 = vor.u32 %v2806_v37, %v2671_v36  ;;  %v2664_v43 = vor.u32 %v2804_v40, %v2663_v39  ;;  %v2655_v44 = vld [vmem:[%s4674_s7 + $0x40] sm:$0xf]  ;;  %v2802_v45 = vld [vmem:[%s4674_s7 + $0x44] sm:$0xf0]  ;;  %v2647_v50 = vld [vmem:[%s4674_s7 + $0x30] sm:$0xf] }
  0x63   :  { %807 = vmatmul.bf16.vlgmr.msra.gmra.mxu0 %v633_v24  ;;  %v2656_v47 = vor.u32 %v2802_v45, %v2655_v44  ;;  %v2800_v52 = vld [vmem:[%s4674_s7 + $0x34] sm:$0xf0]  ;;  %v2639_v56 = vld [vmem:[%s4674_s7 + $0x20] sm:$0xf]  ;;  %v2798_v57 = vld [vmem:[%s4674_s7 + $0x24] sm:$0xf0] }
  0x64   :  { %821 = vmatmul.bf16.vlgmr.msra.gmra.mxu1 %v636_v29  ;;  %835 = vmatmul.bf16.vlgmr.msra.gmra.mxu2 %v633_v24  ;;  %v2648_v55 = vor.u32 %v2800_v52, %v2647_v50  ;;  %v2640_v58 = vor.u32 %v2798_v57, %v2639_v56  ;;  %v2687_v59 = vld [vmem:[%s4674_s7 + $0x80] sm:$0xf]  ;;  %v2810_v60 = vld [vmem:[%s4674_s7 + $0x84] sm:$0xf0]  ;;  %v2807_v62 = vld [vmem:[%s4674_s7 + $0x74] sm:$0xf] }
  0x65   :  { %849 = vmatmul.bf16.vlgmr.msra.gmra.mxu3 %v636_v29  ;;  %1593 = vrot.lane.b32.xlu1 %v2849_v51, %s2889_s23  ;;  %v2688_v61 = vor.u32 %v2810_v60, %v2687_v59  ;;  %v2681_v63 = vld [vmem:[%s4674_s7 + $0x78] sm:$0xf0]  ;;  %v2631_v3 = vld [vmem:[%s4674_s7 + $0x10] sm:$0xf]  ;;  %v2796_v4 = vld [vmem:[%s4674_s7 + $0x14] sm:$0xf0] }
  0x66   :  { %1533 = vrot.lane.b32.xlu0 %v2850_v25, %s2890_s30  ;;  %2005 = vmatpush.bf16.msrb.mxu2 %v2680_v35  ;;  %v2684_v0 = vor.u32 %v2807_v62, %v2681_v63  ;;  %v2632_v5 = vor.u32 %v2796_v4, %v2631_v3  ;;  %v2805_v6 = vld [vmem:[%s4674_s7 + $0x64] sm:$0xf]  ;;  %v2673_v7 = vld [vmem:[%s4674_s7 + $0x68] sm:$0xf0]  ;;  %v2623_v9 = vld [vmem:[%s4674_s7] sm:$0xf] }
  0x67   :  { %1221 = vrot.lane.b32.xlu2 %v2851_v26, %s2889_s23  ;;  %2026 = vmatpush.bf16.msrb.mxu3 %v2688_v61  ;;  %v2676_v8 = vor.u32 %v2805_v6, %v2673_v7  ;;  %v2794_v10 = vld [vmem:[%s4674_s7 + $0x4] sm:$0xf0]  ;;  %v2803_v12 = vld [vmem:[%s4674_s7 + $0x54] sm:$0xf]  ;;  %v2665_v13 = vld [vmem:[%s4674_s7 + $0x58] sm:$0xf0] }
  0x68   :  { %v2624_v11 = vor.u32 %v2794_v10, %v2623_v9  ;;  %v2668_v14 = vor.u32 %v2803_v12, %v2665_v13  ;;  %v2801_v17 = vld [vmem:[%s4674_s7 + $0x44] sm:$0xf]  ;;  %v2657_v18 = vld [vmem:[%s4674_s7 + $0x48] sm:$0xf0]  ;;  %v2799_v24 = vld [vmem:[%s4674_s7 + $0x34] sm:$0xf] }
  0x69   :  { %v2660_v19 = vor.u32 %v2801_v17, %v2657_v18  ;;  %v2649_v29 = vld [vmem:[%s4674_s7 + $0x38] sm:$0xf0]  ;;  %v2797_v25 = vld [vmem:[%s4674_s7 + $0x24] sm:$0xf]  ;;  %v2641_v26 = vld [vmem:[%s4674_s7 + $0x28] sm:$0xf0] }
  0x6a   :  { %2006 = vmatpush.bf16.msrb.mxu2 %v2672_v38  ;;  %v2652_v51 = vor.u32 %v2799_v24, %v2649_v29  ;;  %v2795_v34 = vld [vmem:[%s4674_s7 + $0x14] sm:$0xf]  ;;  %v2633_v35 = vld [vmem:[%s4674_s7 + $0x18] sm:$0xf0]  ;;  %v2793_v44 = vld [vmem:[%s4674_s7 + $0x4] sm:$0xf] }
  0x6b   :  { %2033 = vmatpush.bf16.msra.mxu3 %v2684_v0  ;;  %v2636_v38 = vor.u32 %v2795_v34, %v2633_v35  ;;  %v2625_v45 = vld [vmem:[%s4674_s7 + $0x8] sm:$0xf0]  ;;  %vm877_vm5 = vcmask 1041408   ;;  %s2894_s5 = smov 120   ;;  %s2895_s14 = smov 124   ;;  %vm2001_vm6 = vcmask 130048  }
  0x6c   :  { %v2628_v52 = vor.u32 %v2793_v44, %v2625_v45  ;;  %vm1208_vm7 = vcmask 1045504   ;;  %vm1394_vm8 = vcmask 1044480   ;;  %vm1580_vm9 = vcmask 1043456   ;;  %s2089_s29 = sshll.u32 %s4676_s9, 4  ;;  %s2897_s11 = smov [#allocation2]   ;;  %s2090_s29 = int_to_ptr.hbm [resolvable:$true] %s2089_s29 }
  0x6d   :  { %1677 = vrot.lane.b32.xlu1 %v2852_v27, %s2891_s12  ;;  %v2644_v27 = vor.u32 %v2797_v25, %v2641_v26  ;;  %vm978_vm10 = vcmask 949248   ;;  %vm920_vm11 = vcmask 1014784   ;;  %vm949_vm12 = vcmask 982016   ;;  %s2087_s13 = sshll.u32 %s2897_s11, 4  ;;  %s2088_s13 = int_to_ptr.vmem [resolvable:$true] %s2087_s13 }
  0x6e   :  { %1719 = vrot.lane.b32.xlu0 %v2853_v28, %s2890_s30  ;;  %2007 = vmatpush.bf16.msrb.mxu2 %v2664_v43  ;;  %vm1007_vm13 = vcmask 916480  }
  0x6f   :  { %1347 = vrot.lane.b32.xlu2 %v2854_v30, %s2890_s30  ;;  %2034 = vmatpush.bf16.msra.mxu3 %v2676_v8 }
  0x72   :  { %2008 = vmatpush.bf16.msrb.mxu2 %v2656_v47 }
  0x73   :  { %2035 = vmatpush.bf16.msra.mxu3 %v2668_v14 }
  0x76   :  { %2009 = vmatpush.bf16.msrb.mxu2 %v2648_v55 }
  0x77   :  { %1491 = vrot.lane.b32.xlu2 %v2855_v31, %s2891_s12  ;;  %2036 = vmatpush.bf16.msra.mxu3 %v2660_v19  ;;  %v3764_v31 = vld [vmem:[%s4669_s2] sm:$0x3]  ;;  %s2896_s12 = smov 112  }
  0x78   :  { %v861_v43 = vperm.slane %v3764_v31, 0  ;;  %v862_v63 = vperm.slane %v3764_v31, 1 }
  0x7a   :  { %2010 = vmatpush.bf16.msrb.mxu2 %v2640_v58 }
  0x7b   :  { %2037 = vmatpush.bf16.msra.mxu3 %v2652_v51 }
  0x7e   :  { %2011 = vmatpush.bf16.msrb.mxu2 %v2632_v5 }
  0x7f   :  { %1635 = vrot.lane.b32.xlu2 %v2856_v32, %s2892_s22  ;;  %2038 = vmatpush.bf16.msra.mxu3 %v2644_v27 }
  0x82   :  { %2012 = vmatpush.bf16.msrb.mxu2 %v2624_v11 }
  0x83   :  { %2039 = vmatpush.bf16.msra.mxu3 %v2636_v38 }
  0x87   :  { %2040 = vmatpush.bf16.msra.mxu3 %v2628_v52 }
  0xa1   :  { %v3772_v39 = vpop.permute.xlu2 %930 }
  0xa5   :  { %v3759_v28 = vpop.permute.xlu0 %901 }
  0xa9   :  { %v3788_v4 = vpop.permute.xlu2 %959 }
  0xab   :  { %v330_v41 = vpop.f32.mrf.mxu0 }
  0xad   :  { %v3785_v56 = vpop.permute.xlu0 %988 }
  0xaf   :  { %v344_v42 = vpop.f32.mrf.mxu1 }
  0xb0   :  { %v345_v23 = vadd.f32 %v344_v42, %v330_v41 }
  0xb2   :  { %v3681_v48 = vpop.f32.mrf.mxu2 }
  0xb3   :  { %v3691_v53 = vpop.f32.mrf.mxu0 }
  0xb5   :  { %v3804_v18 = vpop.permute.xlu0 %1119 }
  0xb6   :  { %v3683_v49 = vpop.f32.mrf.mxu3 }
  0xb7   :  { %v3693_v54 = vpop.f32.mrf.mxu1  ;;  %v373_v40 = vadd.f32 %v3683_v49, %v3681_v48 }
  0xb8   :  { %v347_v50 = vadd.f32 %v3693_v54, %v3691_v53 }
  0xba   :  { %v3713_v1 = vpop.f32.mrf.mxu2 }
  0xbe   :  { %v3715_v2 = vpop.f32.mrf.mxu3 }
  0xbf   :  { %v375_v5 = vadd.f32 %v3715_v2, %v3713_v1 }
  0xc0   :  { %v546_v22 = vpop.f32.mrf.mxu0 }
  0xc1   :  { %v547_v30 = vadd.f32 %v546_v22, %v345_v23 }
  0xc3   :  { %v560_v46 = vpop.f32.mrf.mxu1 }
  0xc4   :  { %v561_v41 = vadd.f32 %v560_v46, %v547_v30  ;;  %v3823_v30 = vpop.permute.xlu2 %1077 }
  0xc7   :  { %v574_v15 = vpop.f32.mrf.mxu2 }
  0xc8   :  { %v548_v20 = vpop.f32.mrf.mxu0  ;;  %v575_v55 = vadd.f32 %v574_v15, %v373_v40 }
  0xc9   :  { %v549_v49 = vadd.f32 %v548_v20, %v347_v50  ;;  %v3808_v20 = vpop.permute.xlu1 %1035 }
  0xca   :  { %v588_v16 = vpop.f32.mrf.mxu3 }
  0xcb   :  { %v562_v21 = vpop.f32.mrf.mxu1  ;;  %v589_v60 = vadd.f32 %v588_v16, %v575_v55 }
  0xcc   :  { %v563_v53 = vadd.f32 %v562_v21, %v549_v49 }
  0xcf   :  { %v576_v32 = vpop.f32.mrf.mxu2 }
  0xd0   :  { %v577_v10 = vadd.f32 %v576_v32, %v375_v5 }
  0xd2   :  { %v590_v33 = vpop.f32.mrf.mxu3 }
  0xd3   :  { %v591_v15 = vadd.f32 %v590_v33, %v577_v10 }
  0xe0   :  { %v808_v36 = vpop.f32.mrf.mxu0 }
  0xe1   :  { %v822_v37 = vpop.f32.mrf.mxu1 }
  0xe2   :  { %v823_v42 = vadd.f32 %v822_v37, %v808_v36  ;;  %v3841_v37 = vpop.permute.xlu0 %1263 }
  0xe4   :  { %v855_v47 = vadd.f32 %v823_v42, %v561_v41  ;;  %v3847_v41 = vpop.permute.xlu1 %1161 }
  0xe6   :  { %v865_v48 = vadd.f32 %v861_v43, %v855_v47 }
  0xe7   :  { %v836_v58 = vpop.f32.mrf.mxu2 }
  0xe8   :  { %v869_v57 = vmax.f32 %v865_v48, 0.0  ;;  %v850_v59 = vpop.f32.mrf.mxu3  ;;  %v810_v0 = vpop.f32.mrf.mxu0 }
  0xe9   :  { %v851_v62 = vadd.f32 %v850_v59, %v836_v58  ;;  %v824_v3 = vpop.f32.mrf.mxu1  ;;  %v3874_v59 = vpop.permute.xlu2 %1221 }
  0xea   :  { %v878_v61 = vrot.slane %v869_v57, 6  ;;  %v825_v54 = vadd.f32 %v824_v3, %v810_v0 }
  0xeb   :  { %v856_v7 = vadd.f32 %v851_v62, %v589_v60 }
  0xec   :  { %v3793_v6 = vsel %vm877_vm5, 0.0, %v878_v61  ;;  %v857_v22 = vadd.f32 %v825_v54, %v563_v53 }
  0xed   :  { %v962_v46 = vmul.f32 %v3788_v4, %v3793_v6  ;;  %v933_v8 = vmul.f32 %v3772_v39, %v3793_v6  ;;  %v904_v9 = vmul.f32 %v3759_v28, %v3793_v6  ;;  %v866_v11 = vadd.f32 %v862_v63, %v856_v7 }
  0xee   :  { %v867_v12 = vadd.f32 %v861_v43, %v857_v22  ;;  %v991_v29 = vmul.f32 %v3785_v56, %v3793_v6  ;;  %v1122_v45 = vmul.f32 %v3804_v18, %v3793_v6  ;;  %v1038_v47 = vmul.f32 %v3808_v20, %v3793_v6 }
  0xef   :  { %970 = vrot.lane.b32.xlu1 %v962_v46, %s2893_s1  ;;  %941 = vrot.lane.b32.xlu2 %v933_v8, %s2894_s5  ;;  %v870_v1 = vmax.f32 %v866_v11, 0.0  ;;  %v838_v13 = vpop.f32.mrf.mxu2  ;;  %v1080_v55 = vmul.f32 %v3823_v30, %v3793_v6  ;;  %v1164_v62 = vmul.f32 %v3847_v41, %v3793_v6  ;;  %v3886_v53 = vmul.f32 %v3874_v59, %v3793_v6  ;;  %v3895_v46 = vpop.permute.xlu0 %1407 }
  0xf0   :  { %912 = vrot.lane.b32.xlu0 %v904_v9, %s2895_s14  ;;  %v871_v2 = vmax.f32 %v867_v12, 0.0  ;;  %v852_v14 = vpop.f32.mrf.mxu3  ;;  %v1134_v0 = vrot.slane %v1122_v45, 1  ;;  %v1050_v3 = vrot.slane %v1038_v47, 1  ;;  %v3900_v12 = vpop.permute.xlu1 %1305 }
  0xf1   :  { %v879_v16 = vrot.slane %v870_v1, 6  ;;  %v853_v17 = vadd.f32 %v852_v14, %v838_v13  ;;  %v1092_v7 = vrot.slane %v1080_v55, 1  ;;  %v1176_v13 = vrot.slane %v1164_v62, 1 }
  0xf2   :  { %v3806_v19 = vpack.c.bf16 %v871_v2, %v869_v57  ;;  %v880_v51 = vrot.slane %v871_v2, 6  ;;  %v3905_v14 = vmul.f32 %v3895_v46, %v3793_v6 }
  0xf3   :  { %v3811_v21 = vsel %vm877_vm5, 0.0, %v879_v16  ;;  %v858_v23 = vadd.f32 %v853_v17, %v591_v15 }
  0xf4   :  { %2013 = vmatmul.bf16.vlgmr.msrb.gmra.mxu2 %v3806_v19  ;;  %v905_v24 = vmul.f32 %v3759_v28, %v3811_v21  ;;  %v934_v26 = vmul.f32 %v3772_v39, %v3811_v21  ;;  %v3826_v31 = vsel %vm877_vm5, %v878_v61, %v880_v51  ;;  %v3831_v34 = vsel %vm877_vm5, %v880_v51, 0.0 }
  0xf5   :  { %v868_v25 = vadd.f32 %v862_v63, %v858_v23  ;;  %v963_v38 = vmul.f32 %v3788_v4, %v3811_v21  ;;  %v906_v40 = vmul.f32 %v3759_v28, %v3826_v31  ;;  %v992_v42 = vmul.f32 %v3785_v56, %v3811_v21 }
  0xf6   :  { %v1040_v43 = vmul.f32 %v3808_v20, %v3826_v31  ;;  %v1042_v44 = vmul.f32 %v3808_v20, %v3831_v34  ;;  %v3866_v48 = vmul.f32 %v3804_v18, %v3826_v31  ;;  %v1166_v49 = vmul.f32 %v3847_v41, %v3826_v31 }
  0xf7   :  { %914 = vrot.lane.b32.xlu1 %v905_v24, %s2895_s14  ;;  %999 = vrot.lane.b32.xlu2 %v991_v29, %s2896_s12  ;;  %v872_v27 = vmax.f32 %v868_v25, 0.0  ;;  %v1168_v57 = vmul.f32 %v3847_v41, %v3831_v34  ;;  %v1082_v58 = vmul.f32 %v3823_v30, %v3826_v31  ;;  %v1084_v60 = vmul.f32 %v3823_v30, %v3831_v34 }
  0xf8   :  { %943 = vrot.lane.b32.xlu0 %v934_v26, %s2894_s5  ;;  %v1051_v50 = vrot.slane %v1040_v43, 1  ;;  %v1056_v52 = vrot.slane %v1042_v44, 1  ;;  %v1266_v61 = vmul.f32 %v3841_v37, %v3793_v6  ;;  %v935_v63 = vmul.f32 %v3772_v39, %v3826_v31 }
  0xf9   :  { %v882_v32 = vrot.slane %v872_v27, 6  ;;  %v3828_v33 = vpack.c.bf16 %v872_v27, %v870_v1  ;;  %v964_v5 = vmul.f32 %v3788_v4, %v3826_v31  ;;  %v3893_v22 = vmul.f32 %v3841_v37, %v3826_v31 }
  0xfa   :  { %v1057_v54 = vsel %vm630_vm4, %v1051_v50, %v1056_v52  ;;  %v1135_v8 = vrot.slane %v3866_v48, 1  ;;  %v1177_v9 = vrot.slane %v1166_v49, 1  ;;  %v1182_v10 = vrot.slane %v1168_v57, 1 }
  0xfb   :  { %4682 = vst [vmem:[#allocation5_spill] sm:$0xff] %v3828_v33  ;;  %v3834_v35 = vsel %vm877_vm5, %v879_v16, %v882_v32  ;;  %v3837_v36 = vsel %vm877_vm5, %v882_v32, 0.0  ;;  %2693 = vmatmul.msk.bf16.vlgmr.msrb.gmra.mxu3 %vm2001_vm6, %v3828_v33  ;;  %v1093_v11 = vrot.slane %v1082_v58, 1  ;;  %v1098_v1 = vrot.slane %v1084_v60, 1 }
  0xfc   :  { %v1278_v2 = vrot.slane %v1266_v61, 2  ;;  %v993_v15 = vmul.f32 %v3785_v56, %v3826_v31  ;;  %v1126_v16 = vmul.f32 %v3804_v18, %v3831_v34  ;;  %v3914_v23 = vmul.f32 %v3900_v12, %v3793_v6 }
  0xfd   :  { %v1052_v24 = vsel %vm630_vm4, %v1050_v3, %v1051_v50  ;;  %v4677_v29 = vrot.slane %v3893_v22, 2  ;;  %v3920_v51 = vmul.f32 %v3900_v12, %v3826_v31  ;;  %v3924_v25 = vmul.f32 %v3900_v12, %v3831_v34 }
  0xfe   :  { %v1136_v26 = vsel %vm630_vm4, %v1134_v0, %v1135_v8  ;;  %v1183_v27 = vsel %vm630_vm4, %v1177_v9, %v1182_v10  ;;  %v1094_v32 = vsel %vm630_vm4, %v1092_v7, %v1093_v11  ;;  %v3942_v43 = vmul.f32 %v3874_v59, %v3831_v34 }
  0xff   :  { %972 = vrot.lane.b32.xlu2 %v963_v38, %s2893_s1  ;;  %916 = vrot.lane.b32.xlu1 %v906_v40, %s2895_s14  ;;  %v3932_v38 = vsel %vm630_vm4, %v1176_v13, %v1177_v9  ;;  %v1099_v40 = vsel %vm630_vm4, %v1093_v11, %v1098_v1  ;;  %v1081_v44 = vmul.f32 %v3823_v30, %v3811_v21  ;;  %v1140_v45 = vrot.slane %v1126_v16, 1 }
 0x100   :  { %1001 = vrot.lane.b32.xlu0 %v992_v42, %s2896_s12  ;;  %v3938_v42 = vmul.f32 %v3874_v59, %v3826_v31  ;;  %v1083_v47 = vmul.f32 %v3823_v30, %v3834_v35  ;;  %v1043_v50 = vmul.f32 %v3808_v20, %v3837_v36  ;;  %v3955_v52 = vsel %vm1208_vm7, %v1278_v2, %v4677_v29 }
 0x101   :  { %v4678_v55 = vrot.slane %v3920_v51, 2  ;;  %v1326_v49 = vrot.slane %v3924_v25, 2  ;;  %v1095_v57 = vrot.slane %v1081_v44, 1  ;;  %v1125_v62 = vmul.f32 %v3804_v18, %v3834_v35 }
 0x102   :  { %v1096_v58 = vrot.slane %v1083_v47, 1  ;;  %v1058_v61 = vrot.slane %v1043_v50, 1  ;;  %v1127_v0 = vmul.f32 %v3804_v18, %v3837_v36  ;;  %v1123_v3 = vmul.f32 %v3804_v18, %v3811_v21 }
 0x103   :  { %v1138_v10 = vrot.slane %v1125_v62, 1  ;;  %v1225_v11 = vmul.f32 %v3874_v59, %v3811_v21  ;;  %v1227_v18 = vmul.f32 %v3874_v59, %v3834_v35  ;;  %v1169_v16 = vmul.f32 %v3847_v41, %v3837_v36 }
 0x104   :  { %v3974_v7 = vsel %vm630_vm4, %v1095_v57, %v1096_v58  ;;  %v1142_v1 = vrot.slane %v1127_v0, 1  ;;  %v1137_v2 = vrot.slane %v1123_v3, 1  ;;  %v1141_v50 = vsel %vm630_vm4, %v1135_v8, %v1140_v45 }
 0x105   :  { %v1271_v3 = vmul.f32 %v3841_v37, %v3837_v36  ;;  %v4098_v29 = vmul.f32 %v3895_v46, %v3826_v31 }
 0x106   :  { %v3993_v44 = vsel %vm630_vm4, %v1137_v2, %v1138_v10 }
 0x107   :  { %1064 = vrot.lane.b32.xlu2 %v1057_v54, %s2895_s14  ;;  %945 = vrot.lane.b32.xlu1 %v935_v63, %s2894_s5  ;;  %v1237_v63 = vrot.slane %v3938_v42, 2  ;;  %v1039_v54 = vmul.f32 %v3808_v20, %v3811_v21 }
 0x108   :  { %974 = vrot.lane.b32.xlu0 %v964_v5, %s2893_s1  ;;  %v3971_v5 = vpop.permute.xlu2 %1347 }
 0x109   :  { %v1053_v13 = vrot.slane %v1039_v54, 1  ;;  %v1165_v54 = vmul.f32 %v3847_v41, %v3811_v21 }
 0x10b   :  { %2041 = vmatmul.bf16.vlgmr.msra.gmra.mxu3 %v3806_v19  ;;  %v1041_v19 = vmul.f32 %v3808_v20, %v3834_v35  ;;  %v1167_v20 = vmul.f32 %v3847_v41, %v3834_v35  ;;  %v1179_v2 = vrot.slane %v1165_v54, 1  ;;  %v1313_v41 = vmul.f32 %v3900_v12, %v3837_v36 }
 0x10c   :  { %v1415_v54 = vmul.f32 %v3895_v46, %v3837_v36 }
 0x10d   :  { %v1054_v60 = vrot.slane %v1041_v19, 1  ;;  %v1240_v19 = vrot.slane %v1227_v18, 2  ;;  %v1180_v57 = vrot.slane %v1167_v20, 1  ;;  %v1229_v20 = vmul.f32 %v3874_v59, %v3837_v36 }
 0x10f   :  { %1144 = vrot.lane.b32.xlu2 %v1136_v26, %s2893_s1  ;;  %1003 = vrot.lane.b32.xlu1 %v993_v15, %s2896_s12  ;;  %v3977_v9 = vsel %vm630_vm4, %v1054_v60, %v1058_v61  ;;  %v1239_v15 = vrot.slane %v1225_v11, 2  ;;  %v3990_v26 = vsel %vm630_vm4, %v1138_v10, %v1142_v1  ;;  %v3996_v47 = vsel %vm630_vm4, %v1053_v13, %v1054_v60  ;;  %v4021_v10 = vpop.permute.xlu1 %1449 }
 0x110   :  { %1060 = vrot.lane.b32.xlu0 %v1052_v24, %s2895_s14  ;;  %v1085_v24 = vmul.f32 %v3823_v30, %v3837_v36  ;;  %v1184_v61 = vrot.slane %v1169_v16, 1  ;;  %v1269_v30 = vmul.f32 %v3841_v37, %v3834_v35  ;;  %v1267_v60 = vmul.f32 %v3841_v37, %v3811_v21  ;;  %v4040_v16 = vpop.permute.xlu2 %1491 }
 0x111   :  { %v4002_v0 = vsel %vm1208_vm7, %v1239_v15, %v1240_v19  ;;  %v1353_v13 = vmul.f32 %v3971_v5, %v3834_v35  ;;  %v1499_v25 = vmul.f32 %v4040_v16, %v3837_v36 }
 0x112   :  { %v1100_v62 = vrot.slane %v1085_v24, 1  ;;  %v4014_v8 = vsel %vm630_vm4, %v1180_v57, %v1184_v61  ;;  %v1282_v11 = vrot.slane %v1269_v30, 2  ;;  %v1281_v1 = vrot.slane %v1267_v60, 2 }
 0x113   :  { %v4043_v24 = vsel %vm630_vm4, %v1179_v2, %v1180_v57  ;;  %v1366_v61 = vrot.slane %v1353_v13, 2  ;;  %v1328_v30 = vrot.slane %v1313_v41, 2  ;;  %v1413_v60 = vmul.f32 %v3895_v46, %v3834_v35 }
 0x114   :  { %v4017_v45 = vsel %vm630_vm4, %v1096_v58, %v1100_v62  ;;  %v1311_v58 = vmul.f32 %v3900_v12, %v3834_v35  ;;  %v1309_v57 = vmul.f32 %v3900_v12, %v3811_v21  ;;  %v1430_v13 = vrot.slane %v1415_v54, 3 }
 0x115   :  { %v1426_v2 = vrot.slane %v1413_v60, 3  ;;  %v1455_v12 = vmul.f32 %v4021_v10, %v3834_v35 }
 0x116   :  { %v1324_v62 = vrot.slane %v1311_v58, 2  ;;  %v1323_v41 = vrot.slane %v1309_v57, 2 }
 0x117   :  { %1190 = vrot.lane.b32.xlu2 %v1183_v27, %s2896_s12  ;;  %1102 = vrot.lane.b32.xlu1 %v1094_v32, %s2894_s5  ;;  %v1286_v27 = vrot.slane %v1271_v3, 2  ;;  %v1351_v32 = vmul.f32 %v3971_v5, %v3811_v21  ;;  %v1244_v3 = vrot.slane %v1229_v20, 2  ;;  %v4090_v57 = vpop.permute.xlu1 %1593 }
 0x118   :  { %1106 = vrot.lane.b32.xlu0 %v1099_v40, %s2894_s5  ;;  %v4036_v40 = vsel %vm1208_vm7, %v1281_v1, %v1282_v11  ;;  %v1495_v1 = vmul.f32 %v4040_v16, %v3811_v21  ;;  %v4086_v60 = vsel %vm1208_vm7, %v1323_v41, %v1324_v62  ;;  %v4111_v17 = vpop.permute.xlu2 %1635  ;;  %v1601_v42 = vmul.f32 %v4090_v57, %v3837_v36 }
 0x119   :  { %v4033_v18 = vsel %vm1208_vm7, %v1282_v11, %v1286_v27  ;;  %v1365_v15 = vrot.slane %v1351_v32, 2  ;;  %v1411_v11 = vmul.f32 %v3895_v46, %v3811_v21  ;;  %v4055_v27 = vsel %vm1208_vm7, %v1324_v62, %v1328_v30  ;;  %v4071_v30 = vpop.permute.xlu0 %1533 }
 0x11a   :  { %v4062_v32 = vsel %vm1208_vm7, %v1240_v19, %v1244_v3  ;;  %v1509_v20 = vrot.slane %v1495_v1, 3  ;;  %v4076_v19 = vsel %vm1394_vm8, %v1426_v2, %v1430_v13  ;;  %v1355_v3 = vmul.f32 %v3971_v5, %v3837_v36 }
 0x11b   :  { %v4052_v59 = vsel %vm1208_vm7, %v1365_v15, %v1366_v61  ;;  %v1425_v58 = vrot.slane %v1411_v11, 3  ;;  %v1497_v15 = vmul.f32 %v4040_v16, %v3834_v35  ;;  %v1468_v11 = vrot.slane %v1455_v12, 3 }
 0x11c   :  { %v1370_v13 = vrot.slane %v1355_v3, 2 }
 0x11d   :  { %v1510_v54 = vrot.slane %v1497_v15, 3  ;;  %v1453_v15 = vmul.f32 %v4021_v10, %v3811_v21 }
 0x11f   :  { %1288 = vrot.lane.b32.xlu2 %v3955_v52, %s2894_s5  ;;  %1148 = vrot.lane.b32.xlu1 %v1141_v50, %s2893_s1  ;;  %v4079_v52 = vsel %vm1394_vm8, %v1425_v58, %v1426_v2  ;;  %v1457_v50 = vmul.f32 %v4021_v10, %v3837_v36  ;;  %v1541_v2 = vmul.f32 %v4071_v30, %v3837_v36 }
 0x120   :  { %1186 = vrot.lane.b32.xlu0 %v3932_v38, %s2896_s12  ;;  %v1539_v38 = vmul.f32 %v4071_v30, %v3834_v35  ;;  %v1537_v58 = vmul.f32 %v4071_v30, %v3811_v21  ;;  %v4101_v62 = vsel %vm1394_vm8, %v1509_v20, %v1510_v54  ;;  %v1327_v20 = vsel %vm1208_vm7, %v4678_v55, %v1326_v49  ;;  %v4161_v55 = vpop.permute.xlu1 %1677 }
 0x121   :  { %v1472_v1 = vrot.slane %v1457_v50, 3  ;;  %v4109_v50 = vsel %vm1208_vm7, %v1366_v61, %v1370_v13  ;;  %v1556_v3 = vrot.slane %v1541_v2, 3  ;;  %v1270_v61 = vmul.f32 %v3841_v37, %v3831_v34 }
 0x122   :  { %v1552_v41 = vrot.slane %v1539_v38, 3  ;;  %v1551_v48 = vrot.slane %v1537_v58, 3  ;;  %v4683_v38 = vrot.slane %v3886_v53, 2  ;;  %v1467_v13 = vrot.slane %v1453_v15, 3 }
 0x123   :  { %v4106_v12 = vsel %vm1394_vm8, %v1468_v11, %v1472_v1  ;;  %v1639_v49 = vmul.f32 %v4111_v17, %v3811_v21  ;;  %v4684_v53 = vrot.slane %v3942_v43, 2  ;;  %v1599_v43 = vmul.f32 %v4090_v57, %v3834_v35 }
 0x124   :  { %v1238_v1 = vsel %vm1208_vm7, %v4683_v38, %v1237_v63  ;;  %v4126_v2 = vsel %vm1394_vm8, %v1552_v41, %v1556_v3  ;;  %v4129_v58 = vsel %vm1394_vm8, %v1551_v48, %v1552_v41  ;;  %v4143_v15 = vsel %vm1394_vm8, %v1467_v13, %v1468_v11 }
 0x125   :  { %v1243_v37 = vsel %vm1208_vm7, %v1237_v63, %v4684_v53  ;;  %v1641_v48 = vmul.f32 %v4111_v17, %v3834_v35  ;;  %v1514_v3 = vrot.slane %v1499_v25, 3  ;;  %v1284_v63 = vrot.slane %v1270_v61, 2 }
 0x126   :  { %v1597_v11 = vmul.f32 %v4090_v57, %v3811_v21  ;;  %v1612_v13 = vrot.slane %v1599_v43, 4  ;;  %v1616_v53 = vrot.slane %v1601_v42, 4  ;;  %v1422_v41 = vrot.slane %v3905_v14, 3 }
 0x127   :  { %1334 = vrot.lane.b32.xlu2 %v1327_v20, %s2893_s1  ;;  %1246 = vrot.lane.b32.xlu1 %v1238_v1, %s2895_s14  ;;  %v1653_v20 = vrot.slane %v1639_v49, 4  ;;  %v1654_v38 = vrot.slane %v1641_v48, 4  ;;  %v4156_v1 = vsel %vm1394_vm8, %v1510_v54, %v1514_v3  ;;  %v1320_v61 = vrot.slane %v3914_v23, 2 }
 0x128   :  { %1250 = vrot.lane.b32.xlu0 %v1243_v37, %s2895_s14  ;;  %v1611_v37 = vrot.slane %v1597_v11, 4  ;;  %v1454_v49 = vmul.f32 %v4021_v10, %v3826_v31  ;;  %v4168_v48 = vsel %vm1580_vm9, %v1612_v13, %v1616_v53  ;;  %v1456_v54 = vmul.f32 %v4021_v10, %v3831_v34 }
 0x129   :  { %v4159_v25 = vsel %vm1580_vm9, %v1653_v20, %v1654_v38  ;;  %4686 = vst [vmem:[#allocation7_spill] sm:$0xff] %v4168_v48  ;;  %v1352_v3 = vmul.f32 %v3971_v5, %v3826_v31  ;;  %v1683_v14 = vmul.f32 %v4161_v55, %v3834_v35  ;;  %v4688_v23 = vrot.slane %v4098_v29, 3  ;;  %v4201_v48 = vpop.permute.xlu0 %1719 }
 0x12a   :  { %4685 = vst [vmem:[#allocation6_spill] sm:$0xff] %v4159_v25  ;;  %v4175_v43 = vsel %vm1580_vm9, %v1611_v37, %v1612_v13  ;;  %v4689_v20 = vrot.slane %v3893_v22, 2  ;;  %v1685_v53 = vmul.f32 %v4161_v55, %v3837_v36  ;;  %v1681_v33 = vmul.f32 %v4161_v55, %v3811_v21 }
 0x12b   :  { %4687 = vst [vmem:[#allocation8_spill] sm:$0xff] %v4175_v43  ;;  %v1424_v42 = vsel %vm1394_vm8, %v1422_v41, %v4688_v23  ;;  %v4690_v13 = vrot.slane %v3920_v51, 2  ;;  %v1354_v41 = vmul.f32 %v3971_v5, %v3831_v34  ;;  %v1696_v22 = vrot.slane %v1683_v14, 4 }
 0x12c   :  { %v1285_v11 = vsel %vm1208_vm7, %v4689_v20, %v1284_v63  ;;  %v1643_v63 = vmul.f32 %v4111_v17, %v3837_v36  ;;  %v1350_v23 = vmul.f32 %v3971_v5, %v3793_v6  ;;  %v1700_v20 = vrot.slane %v1685_v53, 4 }
 0x12d   :  { %v1322_v37 = vsel %vm1208_vm7, %v1320_v61, %v4690_v13  ;;  %v1465_v51 = vrot.slane %v1454_v49, 3  ;;  %v1470_v61 = vrot.slane %v1456_v54, 3  ;;  %v1368_v25 = vrot.slane %v1354_v41, 2 }
 0x12e   :  { %v1658_v13 = vrot.slane %v1643_v63, 4  ;;  %v4204_v43 = vsel %vm1580_vm9, %v1696_v22, %v1700_v20  ;;  %v1362_v49 = vrot.slane %v1350_v23, 2  ;;  %v1538_v53 = vmul.f32 %v4071_v30, %v3826_v31 }
 0x12f   :  { %1432 = vrot.lane.b32.xlu2 %v1424_v42, %s2895_s14  ;;  %1292 = vrot.lane.b32.xlu1 %v1285_v11, %s2894_s5  ;;  %v1695_v42 = vrot.slane %v1681_v33, 4  ;;  %v1363_v11 = vrot.slane %v1352_v3, 2  ;;  %v1727_v33 = vmul.f32 %v4201_v48, %v3837_v36  ;;  %v1723_v3 = vmul.f32 %v4201_v48, %v3811_v21 }
 0x130   :  { %1330 = vrot.lane.b32.xlu0 %v1322_v37, %s2893_s1  ;;  %v1725_v37 = vmul.f32 %v4201_v48, %v3834_v35  ;;  %v4212_v5 = vsel %vm1580_vm9, %v1654_v38, %v1658_v13  ;;  %v1471_v63 = vsel %vm1394_vm8, %v1465_v51, %v1470_v61  ;;  %v1414_v38 = vmul.f32 %v3895_v46, %v3831_v34 }
 0x131   :  { %v4207_v14 = vsel %vm1580_vm9, %v1695_v42, %v1696_v22  ;;  %v1742_v22 = vrot.slane %v1727_v33, 4  ;;  %v1364_v20 = vsel %vm1208_vm7, %v1362_v49, %v1363_v11  ;;  %v1737_v41 = vrot.slane %v1723_v3, 4 }
 0x132   :  { %v1738_v54 = vrot.slane %v1725_v37, 4  ;;  %v1369_v36 = vsel %vm1208_vm7, %v1363_v11, %v1368_v25  ;;  %v1536_v23 = vmul.f32 %v4071_v30, %v3793_v6  ;;  %v1452_v46 = vmul.f32 %v4021_v10, %v3793_v6 }
 0x133   :  { %v1549_v61 = vrot.slane %v1538_v53, 3  ;;  %v1428_v13 = vrot.slane %v1414_v38, 3  ;;  %v4691_v33 = vrot.slane %v4098_v29, 3  ;;  %v1496_v3 = vmul.f32 %v4040_v16, %v3826_v31 }
 0x134   :  { %v4228_v21 = vsel %vm1580_vm9, %v1738_v54, %v1742_v22  ;;  %v4234_v42 = vsel %vm1580_vm9, %v1737_v41, %v1738_v54  ;;  %v1548_v37 = vrot.slane %v1536_v23, 3  ;;  %v1464_v25 = vrot.slane %v1452_v46, 3 }
 0x135   :  { %v1429_v49 = vsel %vm1394_vm8, %v4691_v33, %v1428_v13  ;;  %v1498_v10 = vmul.f32 %v4040_v16, %v3831_v34  ;;  %v1494_v53 = vmul.f32 %v4040_v16, %v3793_v6  ;;  %v1507_v29 = vrot.slane %v1496_v3, 3 }
 0x136   :  { %v1550_v11 = vsel %vm1394_vm8, %v1548_v37, %v1549_v61  ;;  %v1466_v54 = vsel %vm1394_vm8, %v1464_v25, %v1465_v51  ;;  %v1540_v51 = vmul.f32 %v4071_v30, %v3831_v34  ;;  %v994_v23 = vmul.f32 %v3785_v56, %v3834_v35 }
 0x137   :  { %1478 = vrot.lane.b32.xlu2 %v1471_v63, %s2894_s5  ;;  %1372 = vrot.lane.b32.xlu1 %v1364_v20, %s2896_s12  ;;  %v1512_v22 = vrot.slane %v1498_v10, 3  ;;  %v1506_v63 = vrot.slane %v1494_v53, 3  ;;  %v936_v20 = vmul.f32 %v3772_v39, %v3834_v35  ;;  %v907_v39 = vmul.f32 %v3759_v28, %v3834_v35 }
 0x138   :  { %1376 = vrot.lane.b32.xlu0 %v1369_v36, %s2896_s12  ;;  %v1554_v36 = vrot.slane %v1540_v51, 3  ;;  %v965_v13 = vmul.f32 %v3788_v4, %v3834_v35  ;;  %v1600_v53 = vmul.f32 %v4090_v57, %v3831_v34  ;;  %v1682_v51 = vmul.f32 %v4161_v55, %v3826_v31 }
 0x139   :  { %v1508_v38 = vsel %vm1394_vm8, %v1506_v63, %v1507_v29  ;;  %v1513_v41 = vsel %vm1394_vm8, %v1507_v29, %v1512_v22 }
 0x13a   :  { %v1555_v46 = vsel %vm1394_vm8, %v1549_v61, %v1554_v36  ;;  %v1614_v63 = vrot.slane %v1600_v53, 4  ;;  %v4693_v36 = vld [vmem:[#allocation8_spill] sm:$0xff]  ;;  %v1722_v53 = vmul.f32 %v4201_v48, %v3793_v6 }
 0x13f   :  { %1558 = vrot.lane.b32.xlu2 %v1550_v11, %s2896_s12  ;;  %1436 = vrot.lane.b32.xlu1 %v1429_v49, %s2895_s14 }
 0x140   :  { %1474 = vrot.lane.b32.xlu0 %v1466_v54, %s2894_s5 }
 0x147   :  { %947 = vrot.lane.b32.xlu2 %v936_v20, %s2894_s5  ;;  %1516 = vrot.lane.b32.xlu1 %v1508_v38, %s2893_s1 }
 0x148   :  { %1520 = vrot.lane.b32.xlu0 %v1513_v41, %s2893_s1  ;;  %v1640_v41 = vmul.f32 %v4111_v17, %v3826_v31 }
 0x149   :  { %v942_v16 = vpop.permute.xlu2 %941 }
 0x14f   :  { %1005 = vrot.lane.b32.xlu2 %v994_v23, %s2896_s12  ;;  %1562 = vrot.lane.b32.xlu1 %v1555_v46, %s2896_s12  ;;  %v4694_v23 = vld [vmem:[#allocation7_spill] sm:$0xff]  ;;  %v1638_v46 = vmul.f32 %v4111_v17, %v3793_v6 }
 0x150   :  { %918 = vrot.lane.b32.xlu0 %v907_v39, %s2895_s14  ;;  %v1680_v39 = vmul.f32 %v4161_v55, %v3793_v6 }
 0x151   :  { %v1000_v30 = vpop.permute.xlu2 %999 }
 0x157   :  { %1104 = vrot.lane.b32.xlu2 %v3974_v7, %s2894_s5  ;;  %976 = vrot.lane.b32.xlu1 %v965_v13, %s2893_s1 }
 0x158   :  { %1066 = vrot.lane.b32.xlu0 %v3977_v9, %s2895_s14  ;;  %v4288_v9 = vld [vmem:[%s4673_s6] ss:$0 sm:$0xff] }
 0x159   :  { %v973_v28 = vpop.permute.xlu2 %972 }
 0x15f   :  { %1150 = vrot.lane.b32.xlu2 %v3990_v26, %s2893_s1  ;;  %1062 = vrot.lane.b32.xlu1 %v3996_v47, %s2895_s14 }
 0x160   :  { %1146 = vrot.lane.b32.xlu0 %v3993_v44, %s2893_s1  ;;  %v896_v44 = vmul.f32 %v4288_v9, %v3793_v6 }
 0x161   :  { %v971_v56 = vpop.permute.xlu1 %970  ;;  %v4282_v4 = vpop.permute.xlu2 %1064 }
 0x162   :  { %v979_v35 = vsel %vm978_vm10, %v971_v56, %v973_v28  ;;  %v913_v7 = vpop.permute.xlu0 %912 }
 0x167   :  { %1248 = vrot.lane.b32.xlu2 %v4002_v0, %s2895_s14  ;;  %1108 = vrot.lane.b32.xlu1 %v4017_v45, %s2894_s5 }
 0x168   :  { %1192 = vrot.lane.b32.xlu0 %v4014_v8, %s2896_s12 }
 0x169   :  { %v915_v26 = vpop.permute.xlu1 %914  ;;  %v4298_v47 = vpop.permute.xlu2 %1144 }
 0x16a   :  { %v921_v61 = vsel %vm920_vm11, %v913_v7, %v915_v26  ;;  %v944_v37 = vpop.permute.xlu0 %943  ;;  %v1651_v7 = vrot.slane %v1640_v41, 4 }
 0x16b   :  { %v925_v25 = vadd.f32 %v921_v61, %v896_v44  ;;  %v950_v0 = vsel %vm949_vm12, %v942_v16, %v944_v37  ;;  %v4692_v16 = vld [vmem:[#allocation6_spill] sm:$0xff]  ;;  %v1692_v44 = vrot.slane %v1680_v39, 4  ;;  %v1650_v61 = vrot.slane %v1638_v46, 4  ;;  %v2858_v39 = vld [vmem:[%s4673_s6 + $0x5] ss:$0 sm:$0xff] }
 0x16d   :  { %v954_v11 = vadd.f32 %v950_v0, %v925_v25  ;;  %v1652_v25 = vsel %vm1580_vm9, %v1650_v61, %v1651_v7 }
 0x16f   :  { %1294 = vrot.lane.b32.xlu2 %v4033_v18, %s2894_s5  ;;  %1188 = vrot.lane.b32.xlu1 %v4043_v24, %s2896_s12  ;;  %v983_v8 = vadd.f32 %v979_v35, %v954_v11  ;;  %v1693_v35 = vrot.slane %v1682_v51, 4 }
 0x170   :  { %1290 = vrot.lane.b32.xlu0 %v4036_v40, %s2894_s5 }
 0x171   :  { %v4308_v45 = vpop.permute.xlu2 %1190  ;;  %v4310_v33 = vpop.permute.xlu1 %916  ;;  %v1694_v37 = vsel %vm1580_vm9, %v1692_v44, %v1693_v35 }
 0x172   :  { %v1002_v49 = vpop.permute.xlu0 %1001 }
 0x173   :  { %v1008_v3 = vsel %vm1007_vm13, %v1000_v30, %v1002_v49 }
 0x174   :  { %v4313_v54 = vadd.f32 %v1008_v3, %v983_v8  ;;  %v1724_v3 = vmul.f32 %v4201_v48, %v3826_v31 }
 0x177   :  { %1374 = vrot.lane.b32.xlu2 %v4052_v59, %s2896_s12  ;;  %1252 = vrot.lane.b32.xlu1 %v4062_v32, %s2895_s14 }
 0x178   :  { %1336 = vrot.lane.b32.xlu0 %v4055_v27, %s2893_s1 }
 0x179   :  { %v4321_v18 = vpop.permute.xlu2 %1288  ;;  %v946_v40 = vpop.permute.xlu1 %945 }
 0x17a   :  { %v4323_v24 = vpop.permute.xlu0 %974 }
 0x17f   :  { %1438 = vrot.lane.b32.xlu2 %v4076_v19, %s2895_s14  ;;  %1332 = vrot.lane.b32.xlu1 %v4086_v60, %s2893_s1 }
 0x180   :  { %1434 = vrot.lane.b32.xlu0 %v4079_v52, %s2895_s14  ;;  %v1598_v52 = vmul.f32 %v4090_v57, %v3826_v31 }
 0x181   :  { %v4331_v59 = vpop.permute.xlu2 %1334  ;;  %v1004_v32 = vpop.permute.xlu1 %1003 }
 0x182   :  { %v4333_v10 = vpop.permute.xlu0 %1060  ;;  %v1609_v22 = vrot.slane %v1598_v52, 4  ;;  %v1684_v52 = vmul.f32 %v4161_v55, %v3831_v34  ;;  %v1734_v55 = vrot.slane %v1722_v53, 4 }
 0x187   :  { %1518 = vrot.lane.b32.xlu2 %v4101_v62, %s2893_s1  ;;  %1378 = vrot.lane.b32.xlu1 %v4109_v50, %s2896_s12  ;;  %v1596_v50 = vmul.f32 %v4090_v57, %v3793_v6 }
 0x188   :  { %1480 = vrot.lane.b32.xlu0 %v4106_v12, %s2894_s5 }
 0x189   :  { %v4341_v27 = vpop.permute.xlu2 %1432  ;;  %v4343_v19 = vpop.permute.xlu1 %1102  ;;  %v1608_v20 = vrot.slane %v1596_v50, 4 }
 0x18a   :  { %v4345_v60 = vpop.permute.xlu0 %1106 }
 0x18f   :  { %1564 = vrot.lane.b32.xlu2 %v4126_v2, %s2896_s12  ;;  %1476 = vrot.lane.b32.xlu1 %v4143_v15, %s2894_s5  ;;  %v1615_v2 = vsel %vm1580_vm9, %v1609_v22, %v1614_v63  ;;  %v1610_v15 = vsel %vm1580_vm9, %v1608_v20, %v1609_v22  ;;  %v1735_v22 = vrot.slane %v1724_v3, 4  ;;  %v1698_v20 = vrot.slane %v1684_v52, 4 }
 0x190   :  { %1560 = vrot.lane.b32.xlu0 %v4129_v58, %s2896_s12 }
 0x191   :  { %v4357_v62 = vpop.permute.xlu2 %1478  ;;  %v4359_v12 = vpop.permute.xlu1 %1148 }
 0x192   :  { %v4363_v29 = vpop.permute.xlu0 %1186 }
 0x197   :  { %1622 = vrot.lane.b32.xlu2 %v1615_v2, %s2895_s14  ;;  %1522 = vrot.lane.b32.xlu1 %v4156_v1, %s2893_s1  ;;  %v1642_v1 = vmul.f32 %v4111_v17, %v3831_v34 }
 0x198   :  { %1618 = vrot.lane.b32.xlu0 %v1610_v15, %s2895_s14 }
 0x199   :  { %v4371_v58 = vpop.permute.xlu2 %1558  ;;  %v4373_v38 = vpop.permute.xlu1 %1246  ;;  %v1656_v26 = vrot.slane %v1642_v1, 4 }
 0x19a   :  { %v4375_v57 = vpop.permute.xlu0 %1250 }
 0x19b   :  { %v1657_v17 = vsel %vm1580_vm9, %v1651_v7, %v1656_v26 }
 0x19f   :  { %1662 = vrot.lane.b32.xlu2 %v4692_v16, %s2894_s5  ;;  %1620 = vrot.lane.b32.xlu1 %v4693_v36, %s2895_s14  ;;  %v897_v16 = vmul.f32 %v4288_v9, %v3826_v31  ;;  %v1016_v9 = vmul.f32 %v2858_v39, %v3793_v6 }
 0x1a0   :  { %1624 = vrot.lane.b32.xlu0 %v4694_v23, %s2895_s14 }
 0x1a1   :  { %v948_v30 = vpop.permute.xlu2 %947  ;;  %v4393_v13 = vpop.permute.xlu1 %1292 }
 0x1a2   :  { %v951_v28 = vsel %vm949_vm12, %v946_v40, %v948_v30  ;;  %v4396_v56 = vpop.permute.xlu0 %1330  ;;  %v1726_v40 = vmul.f32 %v4201_v48, %v3831_v34 }
 0x1a4   :  { %v1740_v63 = vrot.slane %v1726_v40, 4 }
 0x1a6   :  { %v1741_v2 = vsel %vm1580_vm9, %v1735_v22, %v1740_v63 }
 0x1a7   :  { %1702 = vrot.lane.b32.xlu2 %v1694_v37, %s2893_s1  ;;  %1660 = vrot.lane.b32.xlu1 %v1652_v25, %s2894_s5  ;;  %v1023_v25 = vrot.slane %v1016_v9, 1 }
 0x1a8   :  { %1664 = vrot.lane.b32.xlu0 %v1657_v17, %s2894_s5 }
 0x1a9   :  { %v1006_v0 = vpop.permute.xlu2 %1005  ;;  %v4404_v11 = vpop.permute.xlu1 %1372 }
 0x1aa   :  { %v1009_v8 = vsel %vm1007_vm13, %v1004_v32, %v1006_v0  ;;  %v4407_v49 = vpop.permute.xlu0 %1376 }
 0x1af   :  { %1708 = vrot.lane.b32.xlu2 %v4204_v43, %s2893_s1  ;;  %1666 = vrot.lane.b32.xlu1 %v4212_v5, %s2894_s5  ;;  %v1699_v43 = vsel %vm1580_vm9, %v1693_v35, %v1698_v20  ;;  %v1736_v5 = vsel %vm1580_vm9, %v1734_v55, %v1735_v22 }
 0x1b0   :  { %1704 = vrot.lane.b32.xlu0 %v4207_v14, %s2893_s1 }
 0x1b1   :  { %v4421_v32 = vpop.permute.xlu1 %1436  ;;  %v1105_v48 = vpop.permute.xlu2 %1104 }
 0x1b2   :  { %v4425_v50 = vpop.permute.xlu0 %1474 }
 0x1b7   :  { %1748 = vrot.lane.b32.xlu2 %v1741_v2, %s2896_s12  ;;  %1706 = vrot.lane.b32.xlu1 %v1699_v43, %s2893_s1  ;;  %s2898_s1 = smov 256  }
 0x1b8   :  { %1744 = vrot.lane.b32.xlu0 %v1736_v5, %s2896_s12 }
 0x1b9   :  { %v4433_v14 = vpop.permute.xlu1 %1516  ;;  %v1151_v1 = vpop.permute.xlu2 %1150 }
 0x1ba   :  { %v4435_v15 = vpop.permute.xlu0 %1520 }
 0x1bf   :  { %1746 = vrot.lane.b32.xlu1 %v4234_v42, %s2896_s12  ;;  %v1017_v42 = vmul.f32 %v2858_v39, %v3826_v31 }
 0x1c0   :  { %1750 = vrot.lane.b32.xlu0 %v4228_v21, %s2896_s12  ;;  %v1018_v21 = vmul.f32 %v2858_v39, %v3831_v34 }
 0x1c1   :  { %v4441_v51 = vpop.permute.xlu1 %1562  ;;  %v1024_v26 = vrot.slane %v1017_v42, 1  ;;  %v1249_v37 = vpop.permute.xlu2 %1248 }
 0x1c2   :  { %v919_v41 = vpop.permute.xlu0 %918 }
 0x1c3   :  { %v922_v36 = vsel %vm920_vm11, %v4310_v33, %v919_v41  ;;  %v1026_v33 = vrot.slane %v1018_v21, 1  ;;  %v1025_v3 = vsel %vm630_vm4, %v1023_v25, %v1024_v26 }
 0x1c4   :  { %v926_v23 = vadd.f32 %v922_v36, %v897_v16  ;;  %v1030_v40 = vadd.f32 %v1025_v3, %v4313_v54 }
 0x1c5   :  { %v1027_v17 = vsel %vm630_vm4, %v1024_v26, %v1026_v33 }
 0x1c6   :  { %v955_v46 = vadd.f32 %v951_v28, %v926_v23 }
 0x1c9   :  { %v977_v30 = vpop.permute.xlu1 %976  ;;  %v1295_v54 = vpop.permute.xlu2 %1294 }
 0x1ca   :  { %v1067_v35 = vpop.permute.xlu0 %1066  ;;  %v980_v7 = vsel %vm978_vm10, %v4323_v24, %v977_v30 }
 0x1cb   :  { %v984_v44 = vadd.f32 %v980_v7, %v955_v46  ;;  %v1069_v0 = vsel %vm920_vm11, %v4282_v4, %v1067_v35  ;;  %v2859_v4 = vld [vmem:[%s4673_s6 + $0xa] ss:$0 sm:$0xff] }
 0x1cc   :  { %v1203_v43 = vmul.f32 %v2859_v4, %v3826_v31  ;;  %v1204_v5 = vmul.f32 %v2859_v4, %v3831_v34  ;;  %v1202_v46 = vmul.f32 %v2859_v4, %v3793_v6 }
 0x1cd   :  { %v1013_v61 = vadd.f32 %v1009_v8, %v984_v44  ;;  %v1110_v8 = vsel %vm949_vm12, %v4343_v19, %v1105_v48  ;;  %v1153_v48 = vsel %vm978_vm10, %v4359_v12, %v1151_v1 }
 0x1ce   :  { %v1212_v36 = vrot.slane %v1204_v5, 2 }
 0x1cf   :  { %v1031_v28 = vadd.f32 %v1027_v17, %v1013_v61 }
 0x1d1   :  { %v1063_v52 = vpop.permute.xlu1 %1062  ;;  %v1073_v24 = vadd.f32 %v1069_v0, %v1031_v28  ;;  %v1375_v7 = vpop.permute.xlu2 %1374  ;;  %v1297_v0 = vsel %vm949_vm12, %v4393_v13, %v1295_v54 }
 0x1d2   :  { %v1147_v53 = vpop.permute.xlu0 %1146  ;;  %v1068_v22 = vsel %vm920_vm11, %v4333_v10, %v1063_v52 }
 0x1d3   :  { %v1072_v63 = vadd.f32 %v1068_v22, %v1030_v40  ;;  %v1152_v55 = vsel %vm978_vm10, %v4298_v47, %v1147_v53  ;;  %v1210_v47 = vrot.slane %v1203_v43, 2 }
 0x1d5   :  { %v1114_v20 = vadd.f32 %v1110_v8, %v1072_v63  ;;  %v1213_v21 = vsel %vm1208_vm7, %v1210_v47, %v1212_v36  ;;  %v1380_v8 = vsel %vm1007_vm13, %v4404_v11, %v1375_v7  ;;  %v2615_v11 = vld [vmem:[%s4675_s8 + $0x70] sm:$0xf] }
 0x1d7   :  { %v1156_v2 = vadd.f32 %v1152_v55, %v1114_v20 }
 0x1d9   :  { %v1109_v41 = vpop.permute.xlu1 %1108  ;;  %v1439_v3 = vpop.permute.xlu2 %1438 }
 0x1da   :  { %v1193_v10 = vpop.permute.xlu0 %1192  ;;  %v1111_v16 = vsel %vm949_vm12, %v4345_v60, %v1109_v41  ;;  %v1209_v60 = vrot.slane %v1202_v46, 2  ;;  %v1441_v7 = vsel %vm920_vm11, %v4421_v32, %v1439_v3 }
 0x1db   :  { %v1115_v19 = vadd.f32 %v1111_v16, %v1073_v24  ;;  %v1195_v39 = vsel %vm1007_vm13, %v4308_v45, %v1193_v10  ;;  %v1254_v45 = vsel %vm920_vm11, %v4373_v38, %v1249_v37 }
 0x1dc   :  { %v1211_v1 = vsel %vm1208_vm7, %v1209_v60, %v1210_v47 }
 0x1dd   :  { %v1157_v23 = vadd.f32 %v1153_v48, %v1115_v19  ;;  %v2826_v48 = vld [vmem:[%s4675_s8 + $0x74] sm:$0xf0] }
 0x1de   :  { %v2616_v36 = vor.u32 %v2826_v48, %v2615_v11 }
 0x1df   :  { %v1199_v42 = vadd.f32 %v1195_v39, %v1157_v23  ;;  %v2607_v23 = vld [vmem:[%s4675_s8 + $0x60] sm:$0xf]  ;;  %v2824_v39 = vld [vmem:[%s4675_s8 + $0x64] sm:$0xf0] }
 0x1e0   :  { %1883 = vmatpush.bf16.msrb.mxu0 %v2616_v36 }
 0x1e1   :  { %v1189_v30 = vpop.permute.xlu1 %1188  ;;  %v1217_v35 = vadd.f32 %v1213_v21, %v1199_v42  ;;  %v2861_v42 = vld [vmem:[%s4673_s6 + $0x14] ss:$0 sm:$0xff] }
 0x1e2   :  { %v1291_v9 = vpop.permute.xlu0 %1290  ;;  %v1194_v26 = vsel %vm1007_vm13, %v4363_v29, %v1189_v30  ;;  %v2860_v29 = vld [vmem:[%s4673_s6 + $0xf] ss:$0 sm:$0xff]  ;;  %v2823_v30 = vld [vmem:[%s4675_s8 + $0x64] sm:$0xf] }
 0x1e3   :  { %v1198_v12 = vadd.f32 %v1194_v26, %v1156_v2  ;;  %v1389_v52 = vmul.f32 %v2860_v29, %v3826_v31  ;;  %v1296_v38 = vsel %vm949_vm12, %v4321_v18, %v1291_v9  ;;  %v1388_v37 = vmul.f32 %v2860_v29, %v3793_v6  ;;  %v1519_v2 = vpop.permute.xlu2 %1518 }
 0x1e4   :  { %v1390_v20 = vmul.f32 %v2860_v29, %v3831_v34  ;;  %v2608_v9 = vor.u32 %v2824_v39, %v2607_v23  ;;  %v1575_v26 = vmul.f32 %v2861_v42, %v3826_v31  ;;  %v1524_v31 = vsel %vm978_vm10, %v4433_v14, %v1519_v2  ;;  %v2601_v29 = vld [vmem:[%s4675_s8 + $0x58] sm:$0xf0]  ;;  %v2591_v14 = vld [vmem:[%s4675_s8 + $0x40] sm:$0xf] }
 0x1e5   :  { %v1216_v33 = vadd.f32 %v1211_v1, %v1198_v12  ;;  %v1396_v13 = vrot.slane %v1389_v52, 3  ;;  %v1395_v55 = vrot.slane %v1388_v37, 3 }
 0x1e6   :  { %v1398_v5 = vrot.slane %v1390_v20, 3  ;;  %1884 = vmatpush.bf16.msrb.mxu0 %v2608_v9  ;;  %v2813_v9 = vld [vmem:[%s4675_s8 + $0x14] sm:$0xf] }
 0x1e7   :  { %v1258_v44 = vadd.f32 %v1254_v45, %v1216_v33  ;;  %v1397_v18 = vsel %vm1394_vm8, %v1395_v55, %v1396_v13 }
 0x1e8   :  { %v1399_v47 = vsel %vm1394_vm8, %v1396_v13, %v1398_v5  ;;  %v2818_v5 = vld [vmem:[%s4675_s8 + $0x34] sm:$0xf0] }
 0x1e9   :  { %v1253_v61 = vpop.permute.xlu1 %1252  ;;  %v1300_v24 = vadd.f32 %v1296_v38, %v1258_v44  ;;  %v1576_v38 = vmul.f32 %v2861_v42, %v3831_v34 }
 0x1ea   :  { %v1337_v25 = vpop.permute.xlu0 %1336  ;;  %v1255_v17 = vsel %vm920_vm11, %v4375_v57, %v1253_v61 }
 0x1eb   :  { %v1259_v28 = vadd.f32 %v1255_v17, %v1217_v35  ;;  %v1339_v43 = vsel %vm978_vm10, %v4331_v59, %v1337_v25  ;;  %v2825_v59 = vld [vmem:[%s4675_s8 + $0x74] sm:$0xf]  ;;  %v2609_v35 = vld [vmem:[%s4675_s8 + $0x68] sm:$0xf0]  ;;  %v1565_v1 = vpop.permute.xlu2 %1564  ;;  %v1574_v17 = vmul.f32 %v2861_v42, %v3793_v6 }
 0x1ec   :  { %v2612_v12 = vor.u32 %v2823_v30, %v2609_v35  ;;  %v2567_v35 = vld [vmem:[%s4675_s8 + $0x10] sm:$0xf] }
 0x1ed   :  { %v1301_v40 = vadd.f32 %v1297_v0, %v1259_v28  ;;  %v1582_v28 = vrot.slane %v1575_v26, 4  ;;  %v2599_v0 = vld [vmem:[%s4675_s8 + $0x50] sm:$0xf]  ;;  %v1581_v37 = vrot.slane %v1574_v17, 4  ;;  %v2569_v26 = vld [vmem:[%s4675_s8 + $0x18] sm:$0xf0] }
 0x1ee   :  { %v2689_v17 = vld [vmem:[%s4674_s7 + $0x88] sm:$0xf0] }
 0x1ef   :  { %v1343_v10 = vadd.f32 %v1339_v43, %v1301_v40  ;;  %v2820_v40 = vld [vmem:[%s4675_s8 + $0x44] sm:$0xf0] }
 0x1f0   :  { %v2592_v13 = vor.u32 %v2820_v40, %v2591_v14 }
 0x1f1   :  { %v1333_v53 = vpop.permute.xlu1 %1332 }
 0x1f2   :  { %v1435_v57 = vpop.permute.xlu0 %1434  ;;  %v1338_v22 = vsel %vm978_vm10, %v4396_v56, %v1333_v53  ;;  %v2819_v53 = vld [vmem:[%s4675_s8 + $0x44] sm:$0xf] }
 0x1f3   :  { %v1342_v63 = vadd.f32 %v1338_v22, %v1300_v24  ;;  %v1440_v33 = vsel %vm920_vm11, %v4341_v27, %v1435_v57  ;;  %v2822_v27 = vld [vmem:[%s4675_s8 + $0x54] sm:$0xf0]  ;;  %v2593_v57 = vld [vmem:[%s4675_s8 + $0x48] sm:$0xf0] }
 0x1f4   :  { %v2600_v3 = vor.u32 %v2822_v27, %v2599_v0  ;;  %v2596_v34 = vor.u32 %v2819_v53, %v2593_v57 }
 0x1f5   :  { %v1384_v4 = vadd.f32 %v1380_v8, %v1342_v63 }
 0x1f6   :  { %1885 = vmatpush.bf16.msrb.mxu0 %v2600_v3 }
 0x1f7   :  { %v1402_v54 = vadd.f32 %v1397_v18, %v1384_v4  ;;  %v1623_v4 = vpop.permute.xlu2 %1622 }
 0x1f9   :  { %v1379_v41 = vpop.permute.xlu1 %1378  ;;  %v1444_v45 = vadd.f32 %v1440_v33, %v1402_v54  ;;  %v1584_v54 = vrot.slane %v1576_v38, 4  ;;  %v2572_v33 = vor.u32 %v2813_v9, %v2569_v26 }
 0x1fa   :  { %v1481_v56 = vpop.permute.xlu0 %1480  ;;  %v1381_v16 = vsel %vm1007_vm13, %v4407_v49, %v1379_v41  ;;  %v2617_v49 = vld [vmem:[%s4675_s8 + $0x78] sm:$0xf0]  ;;  %1886 = vmatpush.bf16.msrb.mxu0 %v2592_v13  ;;  %v2817_v41 = vld [vmem:[%s4675_s8 + $0x34] sm:$0xf] }
 0x1fb   :  { %v1385_v19 = vadd.f32 %v1381_v16, %v1343_v10  ;;  %v2620_v21 = vor.u32 %v2825_v59, %v2617_v49  ;;  %v1483_v63 = vsel %vm949_vm12, %v4357_v62, %v1481_v56  ;;  %v2583_v62 = vld [vmem:[%s4675_s8 + $0x30] sm:$0xf]  ;;  %v1567_v10 = vsel %vm1007_vm13, %v4441_v51, %v1565_v1  ;;  %v2585_v56 = vld [vmem:[%s4675_s8 + $0x38] sm:$0xf0]  ;;  %v2575_v16 = vld [vmem:[%s4675_s8 + $0x20] sm:$0xf] }
 0x1fc   :  { %v2588_v48 = vor.u32 %v2817_v41, %v2585_v56  ;;  %v2815_v51 = vld [vmem:[%s4675_s8 + $0x24] sm:$0xf]  ;;  %v2577_v59 = vld [vmem:[%s4675_s8 + $0x28] sm:$0xf0]  ;;  %v2812_v1 = vld [vmem:[%s4675_s8 + $0x4] sm:$0xf0]  ;;  %v2014_v56 = vpop.f32.mrf.mxu2 }
 0x1fd   :  { %v1403_v46 = vadd.f32 %v1399_v47, %v1385_v19  ;;  %1897 = vmatpush.bf16.msrb.mxu1 %v2620_v21  ;;  %v2816_v19 = vld [vmem:[%s4675_s8 + $0x24] sm:$0xf0]  ;;  %v1585_v47 = vsel %vm1580_vm9, %v1582_v28, %v1584_v54  ;;  %v2580_v23 = vor.u32 %v2815_v51, %v2577_v59 }
 0x1fe   :  { %v2576_v49 = vor.u32 %v2816_v19, %v2575_v16  ;;  %v2061_v16 = vld [vmem:[%s4671_s4] sm:$0x3] }
 0x1ff   :  { %v1445_v60 = vadd.f32 %v1441_v7, %v1403_v46  ;;  %v1663_v42 = vpop.permute.xlu2 %1662  ;;  %v2814_v7 = vld [vmem:[%s4675_s8 + $0x14] sm:$0xf0]  ;;  %v2064_v26 = vperm.slane %v2061_v16, 1 }
 0x201   :  { %v1477_v44 = vpop.permute.xlu1 %1476  ;;  %1898 = vmatpush.bf16.msrb.mxu1 %v2612_v12  ;;  %v1487_v20 = vadd.f32 %v1483_v63, %v1445_v60  ;;  %v2568_v60 = vor.u32 %v2814_v7, %v2567_v35  ;;  %v2559_v12 = vld [vmem:[%s4675_s8] sm:$0xf]  ;;  %v2073_v35 = vld [vmem:[%s4667_s0 + $0x10] sm:$0xff] }
 0x202   :  { %v1561_v61 = vpop.permute.xlu0 %1560  ;;  %v1482_v25 = vsel %vm949_vm12, %v4425_v50, %v1477_v44  ;;  %v2821_v50 = vld [vmem:[%s4675_s8 + $0x54] sm:$0xf]  ;;  %v2561_v44 = vld [vmem:[%s4675_s8 + $0x8] sm:$0xf0]  ;;  %v2862_v63 = vld [vmem:[%s4670_s3] ss:$0 sm:$0xff] }
 0x203   :  { %v1486_v32 = vadd.f32 %v1482_v25, %v1444_v45  ;;  %v1566_v52 = vsel %vm1007_vm13, %v4371_v58, %v1561_v61  ;;  %v2604_v24 = vor.u32 %v2821_v50, %v2601_v29  ;;  %v1583_v58 = vsel %vm1580_vm9, %v1581_v37, %v1582_v28  ;;  %v2811_v45 = vld [vmem:[%s4675_s8 + $0x4] sm:$0xf] }
 0x204   :  { %v2809_v61 = vld [vmem:[%s4674_s7 + $0x84] sm:$0xf]  ;;  %v2560_v25 = vor.u32 %v2812_v1, %v2559_v12  ;;  %v2564_v28 = vor.u32 %v2811_v45, %v2561_v44 }
 0x205   :  { %v1528_v6 = vadd.f32 %v1524_v31, %v1486_v32  ;;  %1899 = vmatpush.bf16.msrb.mxu1 %v2604_v24  ;;  %v2692_v31 = vor.u32 %v2809_v61, %v2689_v17 }
 0x207   :  { %v1570_v22 = vadd.f32 %v1566_v52, %v1528_v6  ;;  %v1703_v32 = vpop.permute.xlu2 %1702 }
 0x209   :  { %v1523_v8 = vpop.permute.xlu1 %1522  ;;  %v4573_v55 = vadd.f32 %v1583_v58, %v1570_v22  ;;  %1900 = vmatpush.bf16.msrb.mxu1 %v2596_v34 }
 0x20a   :  { %v1619_v2 = vpop.permute.xlu0 %1618  ;;  %v1525_v18 = vsel %vm978_vm10, %v4435_v15, %v1523_v8  ;;  %v2584_v15 = vor.u32 %v2818_v5, %v2583_v62 }
 0x20b   :  { %v1529_v43 = vadd.f32 %v1525_v18, %v1487_v20 }
 0x20c   :  { %1887 = vmatpush.bf16.msrb.mxu0 %v2584_v15  ;;  %v2028_v15 = vpop.f32.mrf.mxu3 }
 0x20d   :  { %v1571_v11 = vadd.f32 %v1567_v10, %v1529_v43  ;;  %1901 = vmatpush.bf16.msrb.mxu1 %v2588_v48  ;;  %v4695_v10 = vld [vmem:[#allocation5_spill] sm:$0xff]  ;;  %v2063_v48 = vperm.slane %v2061_v16, 0 }
 0x20f   :  { %v1589_v36 = vadd.f32 %v1585_v47, %v1571_v11  ;;  %v1709_v50 = vpop.permute.xlu2 %1708  ;;  %v2071_v47 = vld [vmem:[%s4667_s0] sm:$0xff] }
 0x210   :  { %1888 = vmatpush.bf16.msrb.mxu0 %v2576_v49 }
 0x211   :  { %v1621_v39 = vpop.permute.xlu1 %1620  ;;  %1902 = vmatpush.bf16.msrb.mxu1 %v2580_v23  ;;  %v2016_v23 = vpop.f32.mrf.mxu2 }
 0x212   :  { %v1625_v46 = vpop.permute.xlu0 %1624  ;;  %v1626_v3 = vsel %vm920_vm11, %v1619_v2, %v1621_v39 }
 0x213   :  { %v1627_v14 = vsel %vm920_vm11, %v1623_v4, %v1625_v46  ;;  %v1630_v52 = vadd.f32 %v1626_v3, %v4573_v55 }
 0x214   :  { %1889 = vmatpush.bf16.msrb.mxu0 %v2568_v60  ;;  %v1631_v37 = vadd.f32 %v1627_v14, %v1589_v36  ;;  %v2030_v51 = vpop.f32.mrf.mxu3 }
 0x215   :  { %1903 = vmatpush.bf16.msrb.mxu1 %v2572_v33  ;;  %v2072_v33 = vld [vmem:[%s4667_s0 + $0x8] sm:$0xff] }
 0x217   :  { %v1749_v34 = vpop.permute.xlu2 %1748 }
 0x218   :  { %1890 = vmatpush.bf16.msrb.mxu0 %v2560_v25 }
 0x219   :  { %v1661_v21 = vpop.permute.xlu1 %1660  ;;  %1904 = vmatpush.bf16.msrb.mxu1 %v2564_v28 }
 0x21a   :  { %v1665_v30 = vpop.permute.xlu0 %1664  ;;  %v1668_v40 = vsel %vm949_vm12, %v1661_v21, %v1663_v42 }
 0x21b   :  { %v1672_v53 = vadd.f32 %v1668_v40, %v1630_v52 }
 0x21c   :  { %2054 = vmatpush.bf16.msra.mxu0 %v2692_v31  ;;  %v2074_v31 = vld [vmem:[%s4667_s0 + $0x18] sm:$0xff] }
 0x221   :  { %v1667_v0 = vpop.permute.xlu1 %1666 }
 0x222   :  { %v1705_v27 = vpop.permute.xlu0 %1704  ;;  %v1669_v38 = vsel %vm949_vm12, %v1665_v30, %v1667_v0  ;;  %v2042_v30 = vpop.f32.mrf.mxu3 }
 0x223   :  { %v1710_v24 = vsel %vm978_vm10, %v1703_v32, %v1705_v27  ;;  %v1673_v22 = vadd.f32 %v1669_v38, %v1631_v37 }
 0x224   :  { %v1714_v13 = vadd.f32 %v1710_v24, %v1672_v53 }
 0x229   :  { %v1707_v6 = vpop.permute.xlu1 %1706 }
 0x22a   :  { %v1745_v29 = vpop.permute.xlu0 %1744  ;;  %v1711_v57 = vsel %vm978_vm10, %v1707_v6, %v1709_v50  ;;  %v2044_v25 = vpop.f32.mrf.mxu3 }
 0x22b   :  { %v1715_v8 = vadd.f32 %v1711_v57, %v1673_v22 }
 0x231   :  { %v1747_v58 = vpop.permute.xlu1 %1746 }
 0x232   :  { %v1751_v20 = vpop.permute.xlu0 %1750  ;;  %v1752_v55 = vsel %vm1007_vm13, %v1745_v29, %v1747_v58 }
 0x233   :  { %v1753_v4 = vsel %vm1007_vm13, %v1749_v34, %v1751_v20  ;;  %v1756_v2 = vadd.f32 %v1752_v55, %v1714_v13 }
 0x234   :  { %v1757_v18 = vadd.f32 %v1753_v4, %v1715_v8 }
 0x235   :  { %v1762_v54 = vadd.f32 %v2862_v63, %v1756_v2 }
 0x236   :  { %v1763_v43 = vadd.f32 %v2862_v63, %v1757_v18 }
 0x237   :  { %v1764_v62 = vmax.f32 %v1762_v54, 0.0 }
 0x238   :  { %v1765_v5 = vmax.f32 %v1763_v43, 0.0 }
 0x23a   :  { %v1786_v41 = vpack.c.bf16 %v1765_v5, %v1764_v62 }
 0x23c   :  { %1891 = vmatmul.bf16.vlgmr.msrb.gmra.mxu0 %v1786_v41  ;;  %1905 = vmatmul.bf16.vlgmr.msrb.gmra.mxu1 %v1786_v41 }
 0x24c   :  { %2694 = vmatmul.msk.bf16.vlgmr.msra.gmra.mxu0 %vm2001_vm6, %v4695_v10 }
 0x2b9   :  { %v1892_v19 = vpop.f32.mrf.mxu0  ;;  %v1906_v42 = vpop.f32.mrf.mxu1 }
 0x2ba   :  { %v2015_v11 = vadd.f32 %v2014_v56, %v1892_v19  ;;  %v2043_v9 = vadd.f32 %v2042_v30, %v1906_v42 }
 0x2bc   :  { %v2029_v59 = vadd.f32 %v2028_v15, %v2015_v11 }
 0x2be   :  { %v2067_v36 = vadd.f32 %v2063_v48, %v2029_v59 }
 0x2c0   :  { %v2075_v49 = vadd.f32 %v2071_v47, %v2067_v36 }
 0x2c1   :  { %v1894_v39 = vpop.f32.mrf.mxu0  ;;  %v1908_v44 = vpop.f32.mrf.mxu1 }
 0x2c2   :  { %2079 = vst [vmem:[#allocation2] sm:$0xff] %v2075_v49  ;;  %v2017_v46 = vadd.f32 %v2016_v23, %v1894_v39  ;;  %v2045_v17 = vadd.f32 %v2044_v25, %v1908_v44 }
 0x2c4   :  { %v2031_v21 = vadd.f32 %v2030_v51, %v2017_v46 }
 0x2c6   :  { %v2069_v7 = vadd.f32 %v2063_v48, %v2031_v21 }
 0x2c8   :  { %v2077_v60 = vadd.f32 %v2073_v35, %v2069_v7 }
 0x2c9   :  { %v2056_v12 = vpop.f32.mrf.mxu0 }
 0x2ca   :  { %2081 = vst [vmem:[#allocation2 + $0x10] sm:$0xff] %v2077_v60  ;;  %v2057_v1 = vadd.f32 %v2056_v12, %v2043_v9 }
 0x2cc   :  { %v2068_v45 = vadd.f32 %v2064_v26, %v2057_v1 }
 0x2ce   :  { %v2076_v61 = vadd.f32 %v2072_v33, %v2068_v45 }
 0x2d0   :  { %2080 = vst [vmem:[#allocation2 + $0x8] sm:$0xff] %v2076_v61 }
 0x2d1   :  { %v2058_v32 = vpop.f32.mrf.mxu0 }
 0x2d2   :  { %v2059_v28 = vadd.f32 %v2058_v32, %v2045_v17 }
 0x2d4   :  { %v2070_v0 = vadd.f32 %v2064_v26, %v2059_v28 }
 0x2d6   :  { %v2078_v27 = vadd.f32 %v2074_v31, %v2070_v0 }
 0x2d8   :  { %2082 = vst [vmem:[#allocation2 + $0x18] sm:$0xff] %v2078_v27 }
 0x2d9   :  { %2095 = dma.vmem_to_hbm [thread:$0]  %s2088_s13, 512, %s2090_s29, [#allocation3], %s2898_s1, %s2898_s1, %s2890_s30  }
 0x2da   :  { %2887 = dma.done.wait [#allocation3], 512  }
 0x2db   :  { %2888 = vsyncadd [#allocation3], 4294966784 }
 0x2dc   :  { %2100 = vsyncpa [#allocation3], 1 }

</bundles_post_ra>
